<compile_context>
chip_gen: v6e
topology: v6e:2x2x1
jax: 0.10.0
libtpu: 0.0.40
codegen_flags: <defaults>
</compile_context>

<pallas_src>
import jax
import jax.numpy as jnp
from jax.experimental import pallas as pl
from jax.experimental.pallas import tpu as pltpu


def _round_up(x, m):
    return ((x + m - 1) // m) * m


def _decoder_kernel(emb_ref, w1_ref, b1_ref, w2_ref, b2_ref, w3_ref, b3_ref,
                    out_ref):
    """Fused 3-layer MLP on one batch tile.

    relu(x@W1+b1) -> relu(.@W2+b2) -> .@W3+b3, bf16 MXU inputs, f32 accumulate.
    """
    x = emb_ref[...].astype(jnp.bfloat16)
    h1 = jnp.dot(x, w1_ref[...], preferred_element_type=jnp.float32) + b1_ref[...]
    h1 = jnp.maximum(h1, 0.0).astype(jnp.bfloat16)
    h2 = jnp.dot(h1, w2_ref[...], preferred_element_type=jnp.float32) + b2_ref[...]
    h2 = jnp.maximum(h2, 0.0).astype(jnp.bfloat16)
    out_ref[...] = (
        jnp.dot(h2, w3_ref[...], preferred_element_type=jnp.float32) + b3_ref[...]
    )


def point_cloud_decoder(emb, params):
    """Pallas implementation of PointCloudDecoder.forward.

    Args:
      emb: (B, emb_dim) float32
      params: (w1, b1, w2, b2, w3, b3) with w_i as (in, out), b_i as (1, out)
    Returns:
      out_pc: (B, n_pts, 3) float32
    """
    w1, b1, w2, b2, w3, b3 = params
    # Weights in bf16: native MXU dtype, halves weight HBM traffic + VMEM.
    w1 = w1.astype(jnp.bfloat16)
    w2 = w2.astype(jnp.bfloat16)
    w3 = w3.astype(jnp.bfloat16)
    b1 = b1.astype(jnp.float32)
    b2 = b2.astype(jnp.float32)
    b3 = b3.astype(jnp.float32)

    B, emb_dim = emb.shape
    h1_dim = w1.shape[1]
    h2_dim = w2.shape[1]
    out_dim = w3.shape[1]  # 3 * n_pts

    # Batch tile: big enough to feed the MXU rows, small enough that the live
    # intermediates (TB x 1024 f32) and double-buffered emb/out tiles fit
    # comfortably in VMEM. Pad B so the grid divides evenly.
    TB = 256 if B >= 256 else _round_up(max(B, 1), 8)
    B_pad = _round_up(B, TB)
    emb_p = emb.astype(jnp.float32)
    if B_pad != B:
        emb_p = jnp.pad(emb_p, ((0, B_pad - B), (0, 0)))
    num_tiles = B_pad // TB

    # VMEM budget from actual buffer sizes (weights possibly double-buffered,
    # double-buffered emb/out tiles, live intermediates) + headroom; capped
    # well below v7x's 64 MiB physical VMEM per TensorCore.
    F32, BF16 = 4, 2
    weight_bytes = (emb_dim * h1_dim + h1_dim * h2_dim + h2_dim * out_dim) * BF16
    bias_bytes = (h1_dim + h2_dim + out_dim) * F32
    tile_bytes = TB * (emb_dim + out_dim) * F32
    inter_bytes = TB * (h1_dim + h2_dim) * (F32 + BF16)
    needed = 2 * (weight_bytes + bias_bytes + tile_bytes) + inter_bytes
    vmem_limit = int(min(needed + (8 << 20), 48 << 20))

    flops = 2 * B_pad * (emb_dim * h1_dim + h1_dim * h2_dim + h2_dim * out_dim)
    bytes_accessed = (
        weight_bytes + bias_bytes
        + B_pad * emb_dim * F32 + B_pad * out_dim * F32
    )

    out = pl.pallas_call(
        _decoder_kernel,
        out_shape=jax.ShapeDtypeStruct((B_pad, out_dim), jnp.float32),
        grid=(num_tiles,),
        in_specs=[
            pl.BlockSpec((TB, emb_dim), lambda i: (i, 0)),      # per-tile emb
            pl.BlockSpec((emb_dim, h1_dim), lambda i: (0, 0)),  # resident W1
            pl.BlockSpec((1, h1_dim), lambda i: (0, 0)),        # resident b1
            pl.BlockSpec((h1_dim, h2_dim), lambda i: (0, 0)),   # resident W2
            pl.BlockSpec((1, h2_dim), lambda i: (0, 0)),        # resident b2
            pl.BlockSpec((h2_dim, out_dim), lambda i: (0, 0)),  # resident W3
            pl.BlockSpec((1, out_dim), lambda i: (0, 0)),       # resident b3
        ],
        out_specs=pl.BlockSpec((TB, out_dim), lambda i: (i, 0)),
        compiler_params=pltpu.CompilerParams(
            dimension_semantics=("parallel",),   # megacore split on v7x
            vmem_limit_bytes=vmem_limit,
        ),
        cost_estimate=pl.CostEstimate(
            flops=flops, transcendentals=0, bytes_accessed=bytes_accessed),
    )(emb_p, w1, b1, w2, b2, w3, b3)

    out = out[:B]
    # out.view(bs, -1, 3).float()
    return out.reshape(B, -1, 3).astype(jnp.float32)


def point_fusion_ae_forward(params, colors=None, xyzs=None, masks=None, emb=None):
    """Forward of PointFusionAE. Returns (ap_x, out_pc)."""
    if emb is None:
        # TODO(synk): PoseNet encoder is not provided in the reference module;
        # only the emb-supplied path (decoder hot-path) is implemented.
        raise NotImplementedError("PoseNet encoder not available in reference.")
    ap_x = emb
    out_pc = point_cloud_decoder(ap_x, params)
    return ap_x, out_pc


def init_decoder_params(key, emb_dim, n_pts):
    """Deterministic PyTorch-style (U(-1/sqrt(fan_in), +)) Linear init (f32)."""
    def linear(k, fan_in, fan_out):
        kw, kb = jax.random.split(k)
        bound = 1.0 / (fan_in ** 0.5)
        w = jax.random.uniform(kw, (fan_in, fan_out), jnp.float32, -bound, bound)
        b = jax.random.uniform(kb, (1, fan_out), jnp.float32, -bound, bound)
        return w, b

    k1, k2, k3 = jax.random.split(key, 3)
    w1, b1 = linear(k1, emb_dim, 512)
    w2, b2 = linear(k2, 512, 1024)
    w3, b3 = linear(k3, 1024, 3 * n_pts)
    return (w1, b1, w2, b2, w3, b3)


def _reference_forward_mixed(params, emb):
    """Pure-JAX reference using the same bf16-weight / f32-accumulate recipe."""
    w1, b1, w2, b2, w3, b3 = params
    x = emb.astype(jnp.bfloat16)
    h1 = jnp.dot(x, w1.astype(jnp.bfloat16),
                 preferred_element_type=jnp.float32) + b1
    h1 = jnp.maximum(h1, 0.0).astype(jnp.bfloat16)
    h2 = jnp.dot(h1, w2.astype(jnp.bfloat16),
                 preferred_element_type=jnp.float32) + b2
    h2 = jnp.maximum(h2, 0.0).astype(jnp.bfloat16)
    out = jnp.dot(h2, w3.astype(jnp.bfloat16),
                  preferred_element_type=jnp.float32) + b3
    return out.reshape(emb.shape[0], -1, 3)


def _reference_forward_f32(params, emb):
    """Full-f32 reference (original module semantics)."""
    w1, b1, w2, b2, w3, b3 = params
    h1 = jnp.maximum(emb @ w1 + b1, 0.0)
    h2 = jnp.maximum(h1 @ w2 + b2, 0.0)
    out = h2 @ w3 + b3
    return out.reshape(emb.shape[0], -1, 3)


if __name__ == "__main__":
    B = 2
    EMB_DIM = 64     # small emb_dim (module default is 512)
    N_PTS = 128      # small num_points (module default is 1024)

    root = jax.random.PRNGKey(0)
    k_param, k_emb = jax.random.split(root)

    params = init_decoder_params(k_param, EMB_DIM, N_PTS)
    emb = jax.random.normal(k_emb, (B, EMB_DIM), jnp.float32)

    ap_x, out_pc = point_fusion_ae_forward(params, emb=emb)
    ap_x = jax.block_until_ready(ap_x)
    out_pc = jax.block_until_ready(out_pc)

    assert ap_x.shape == (B, EMB_DIM)
    assert out_pc.shape == (B, N_PTS, 3)
    assert out_pc.dtype == jnp.float32

    # Tight check vs a reference using the identical mixed-precision recipe.
    ref_mixed = _reference_forward_mixed(params, emb)
    assert jnp.allclose(out_pc, ref_mixed, atol=1e-3, rtol=1e-3), \
        "mismatch vs mixed-precision reference"

    # Loose check vs the original f32 semantics (bf16 weight quantization).
    ref_f32 = _reference_forward_f32(params, emb)
    assert jnp.allclose(out_pc, ref_f32, atol=1e-1, rtol=1e-1), \
        "mismatch vs f32 reference"

    print("KERNEL_OK")
</pallas_src>

<mosaic_0001>
module attributes {stable_mosaic.version = 11 : i64} {
  func.func @_decoder_kernel(%arg0: i32, %arg1: memref<8x64xf32, #tpu.memory_space<vmem>>, %arg2: memref<64x512xbf16, #tpu.memory_space<vmem>>, %arg3: memref<1x512xf32, #tpu.memory_space<vmem>>, %arg4: memref<512x1024xbf16, #tpu.memory_space<vmem>>, %arg5: memref<1x1024xf32, #tpu.memory_space<vmem>>, %arg6: memref<1024x384xbf16, #tpu.memory_space<vmem>>, %arg7: memref<1x384xf32, #tpu.memory_space<vmem>>, %arg8: memref<8x384xf32, #tpu.memory_space<vmem>>) attributes {dimension_semantics = [#tpu.dimension_semantics<parallel>], iteration_bounds = array<i64: 1>, scalar_prefetch = 0 : i64, scratch_operands = 0 : i64, tpu.core_type = #tpu.core_type<tc>, window_params = [{transform_indices = @transform_0, window_bounds = array<i64: 8, 64>}, {pipeline_mode = #tpu.pipeline_mode<synchronous>, transform_indices = @transform_1, window_bounds = array<i64: 64, 512>}, {pipeline_mode = #tpu.pipeline_mode<synchronous>, transform_indices = @transform_2, window_bounds = array<i64: 1, 512>}, {pipeline_mode = #tpu.pipeline_mode<synchronous>, transform_indices = @transform_3, window_bounds = array<i64: 512, 1024>}, {pipeline_mode = #tpu.pipeline_mode<synchronous>, transform_indices = @transform_4, window_bounds = array<i64: 1, 1024>}, {pipeline_mode = #tpu.pipeline_mode<synchronous>, transform_indices = @transform_5, window_bounds = array<i64: 1024, 384>}, {pipeline_mode = #tpu.pipeline_mode<synchronous>, transform_indices = @transform_6, window_bounds = array<i64: 1, 384>}, {transform_indices = @transform_7, window_bounds = array<i64: 8, 384>}]} {
    %c0 = arith.constant 0 : index
    %c0_0 = arith.constant 0 : index
    %0 = vector.load %arg1[%c0, %c0_0] : memref<8x64xf32, #tpu.memory_space<vmem>>, vector<8x64xf32>
    %1 = arith.truncf %0 : vector<8x64xf32> to vector<8x64xbf16>
    %c0_1 = arith.constant 0 : index
    %c0_2 = arith.constant 0 : index
    %2 = vector.load %arg2[%c0_1, %c0_2] : memref<64x512xbf16, #tpu.memory_space<vmem>>, vector<64x512xbf16>
    %cst = arith.constant dense<0.000000e+00> : vector<8x512xf32>
    %3 = tpu.matmul %1, %2, %cst {dimension_numbers = #tpu.dot_dimension_numbers<[1], [0], [0], [1], [0, 0, 1, 1], [], []>} : vector<8x64xbf16>, vector<64x512xbf16>, vector<8x512xf32> -> vector<8x512xf32>
    %c0_3 = arith.constant 0 : index
    %c0_4 = arith.constant 0 : index
    %4 = vector.load %arg3[%c0_3, %c0_4] : memref<1x512xf32, #tpu.memory_space<vmem>>, vector<1x512xf32>
    %5 = vector.broadcast %4 : vector<1x512xf32> to vector<8x512xf32>
    %6 = arith.addf %3, %5 : vector<8x512xf32>
    %cst_5 = arith.constant 0.000000e+00 : f32
    %7 = vector.broadcast %cst_5 : f32 to vector<8x512xf32>
    %8 = arith.maximumf %6, %7 : vector<8x512xf32>
    %9 = arith.truncf %8 : vector<8x512xf32> to vector<8x512xbf16>
    %c0_6 = arith.constant 0 : index
    %c0_7 = arith.constant 0 : index
    %10 = vector.load %arg4[%c0_6, %c0_7] : memref<512x1024xbf16, #tpu.memory_space<vmem>>, vector<512x1024xbf16>
    %cst_8 = arith.constant dense<0.000000e+00> : vector<8x1024xf32>
    %11 = tpu.matmul %9, %10, %cst_8 {dimension_numbers = #tpu.dot_dimension_numbers<[1], [0], [0], [1], [0, 0, 1, 1], [], []>} : vector<8x512xbf16>, vector<512x1024xbf16>, vector<8x1024xf32> -> vector<8x1024xf32>
    %c0_9 = arith.constant 0 : index
    %c0_10 = arith.constant 0 : index
    %12 = vector.load %arg5[%c0_9, %c0_10] : memref<1x1024xf32, #tpu.memory_space<vmem>>, vector<1x1024xf32>
    %13 = vector.broadcast %12 : vector<1x1024xf32> to vector<8x1024xf32>
    %14 = arith.addf %11, %13 : vector<8x1024xf32>
    %cst_11 = arith.constant 0.000000e+00 : f32
    %15 = vector.broadcast %cst_11 : f32 to vector<8x1024xf32>
    %16 = arith.maximumf %14, %15 : vector<8x1024xf32>
    %17 = arith.truncf %16 : vector<8x1024xf32> to vector<8x1024xbf16>
    %c0_12 = arith.constant 0 : index
    %c0_13 = arith.constant 0 : index
    %18 = vector.load %arg6[%c0_12, %c0_13] : memref<1024x384xbf16, #tpu.memory_space<vmem>>, vector<1024x384xbf16>
    %cst_14 = arith.constant dense<0.000000e+00> : vector<8x384xf32>
    %19 = tpu.matmul %17, %18, %cst_14 {dimension_numbers = #tpu.dot_dimension_numbers<[1], [0], [0], [1], [0, 0, 1, 1], [], []>} : vector<8x1024xbf16>, vector<1024x384xbf16>, vector<8x384xf32> -> vector<8x384xf32>
    %c0_15 = arith.constant 0 : index
    %c0_16 = arith.constant 0 : index
    %20 = vector.load %arg7[%c0_15, %c0_16] : memref<1x384xf32, #tpu.memory_space<vmem>>, vector<1x384xf32>
    %21 = vector.broadcast %20 : vector<1x384xf32> to vector<8x384xf32>
    %22 = arith.addf %19, %21 : vector<8x384xf32>
    %c0_17 = arith.constant 0 : index
    %c0_18 = arith.constant 0 : index
    %23 = vector.load %arg8[%c0_17, %c0_18] : memref<8x384xf32, #tpu.memory_space<vmem>>, vector<8x384xf32>
    tpu.vector_store %arg8[%c0_17, %c0_18], %22 {strides = array<i32>} : memref<8x384xf32, #tpu.memory_space<vmem>>, vector<8x384xf32>,
    return
  }
  func.func @transform_0(%arg0: i32) -> (i32, i32) {
    %c0_i32 = arith.constant 0 : i32
    %c0_i32_0 = arith.constant 0 : i32
    return %arg0, %c0_i32 : i32, i32
  }
  func.func @transform_1(%arg0: i32) -> (i32, i32) {
    %c0_i32 = arith.constant 0 : i32
    %c0_i32_0 = arith.constant 0 : i32
    %c0_i32_1 = arith.constant 0 : i32
    return %c0_i32, %c0_i32_0 : i32, i32
  }
  func.func @transform_2(%arg0: i32) -> (i32, i32) {
    %c0_i32 = arith.constant 0 : i32
    %c0_i32_0 = arith.constant 0 : i32
    %c0_i32_1 = arith.constant 0 : i32
    return %c0_i32, %c0_i32_0 : i32, i32
  }
  func.func @transform_3(%arg0: i32) -> (i32, i32) {
    %c0_i32 = arith.constant 0 : i32
    %c0_i32_0 = arith.constant 0 : i32
    %c0_i32_1 = arith.constant 0 : i32
    return %c0_i32, %c0_i32_0 : i32, i32
  }
  func.func @transform_4(%arg0: i32) -> (i32, i32) {
    %c0_i32 = arith.constant 0 : i32
    %c0_i32_0 = arith.constant 0 : i32
    %c0_i32_1 = arith.constant 0 : i32
    return %c0_i32, %c0_i32_0 : i32, i32
  }
  func.func @transform_5(%arg0: i32) -> (i32, i32) {
    %c0_i32 = arith.constant 0 : i32
    %c0_i32_0 = arith.constant 0 : i32
    %c0_i32_1 = arith.constant 0 : i32
    return %c0_i32, %c0_i32_0 : i32, i32
  }
  func.func @transform_6(%arg0: i32) -> (i32, i32) {
    %c0_i32 = arith.constant 0 : i32
    %c0_i32_0 = arith.constant 0 : i32
    %c0_i32_1 = arith.constant 0 : i32
    return %c0_i32, %c0_i32_0 : i32, i32
  }
  func.func @transform_7(%arg0: i32) -> (i32, i32) {
    %c0_i32 = arith.constant 0 : i32
    %c0_i32_0 = arith.constant 0 : i32
    return %arg0, %c0_i32 : i32, i32
  }
}

</mosaic_0001>

<bundles_post_ra>
// kernel: tpu_custom_call.1
= control target key start
LH: loop header
LB: loop body
LE: loop exit
PB: predicated region body
PF: predicated region fallthrough
CT: control target
= control target key end

     0   :  { %12 = vsyncpa [#allocation3], 0  ;;  %s5051_s0 = inlined_call_operand.hbm [shape: f32[8,64], index: 0, kind: input, shape index: {}]   ;;  %s5052_s1 = inlined_call_operand.hbm [shape: bf16[64,512], index: 1, kind: input, shape index: {}]   ;;  %s5053_s2 = inlined_call_operand.hbm [shape: f32[1,512], index: 2, kind: input, shape index: {}]   ;;  %s5054_s3 = inlined_call_operand.hbm [shape: bf16[512,1024], index: 3, kind: input, shape index: {}]   ;;  %s5055_s4 = inlined_call_operand.hbm [shape: f32[1,1024], index: 4, kind: input, shape index: {}]   ;;  %s5056_s5 = inlined_call_operand.hbm [shape: bf16[1024,384], index: 5, kind: input, shape index: {}]   ;;  %s5057_s6 = inlined_call_operand.vmem [shape: f32[1,384], index: 6, kind: input, shape index: {}]   ;;  %s5058_s7 = inlined_call_operand.hbm [shape: f32[8,384], index: 7, kind: output, shape index: {}]  }
   0x1   :  { %13 = vsyncpa [#allocation6], 0 }
   0x2   :  { %14 = vsyncpa [#allocation9], 0 }
   0x3   :  { %15 = vsyncpa [#allocation12], 0 }
   0x4   :  { %16 = vsyncpa [#allocation4], 0  ;;  %s4880_s24 = smov [#allocation5]  }
   0x5   :  { %s32_s25 = sshll.u32 %s4880_s24, 4  ;;  %s33_s25 = int_to_ptr.vmem [resolvable:$true] %s32_s25 }
   0x6   :  { %s4738_s26 = scalar_lea.vmem %s33_s25, 2048  ;;  %p4743_p1 = scmp.lt.s32.totalorder %s33_s25, %s33_s25 }
   0x7   :  { %p4739_p0 = scmp.ne.s32.totalorder %s33_s25, %s4738_s26  ;;  %p4744_p2 = scmp.lt.s32.totalorder %s4738_s26, %s4738_s26 }
   0x9   :  { %p4745_p3 = por %p4744_p2, %p4743_p1 }
   0xb   :  { %p4746_p4 = pnand %p4745_p3, %p4739_p0 }
   0xd   :  { %4749 = shalt.err (!%p4746_p4)
}
   0xe   :  { %s4881_s27 = smov 256   ;;  %s4882_s28 = smov 16  }
   0xf   :  { %38 = dma.hbm_to_vmem [thread:$0]  %s5052_s1, 2048, %s33_s25, [#allocation6], %s4881_s27, %s4881_s27, %s4882_s28  }
  0x10   :  { %s4883_s8 = smov [#allocation8]  }
  0x11   :  { %s54_s9 = sshll.u32 %s4883_s8, 4  ;;  %s55_s9 = int_to_ptr.vmem [resolvable:$true] %s54_s9 }
  0x12   :  { %s4758_s10 = scalar_lea.vmem %s55_s9, 32768  ;;  %p4763_p6 = scmp.lt.s32.totalorder %s55_s9, %s55_s9 }
  0x13   :  { %p4759_p5 = scmp.ne.s32.totalorder %s55_s9, %s4758_s10  ;;  %p4764_p7 = scmp.lt.s32.totalorder %s4758_s10, %s4758_s10 }
  0x15   :  { %p4765_p8 = por %p4764_p7, %p4763_p6 }
  0x17   :  { %p4766_p9 = pnand %p4765_p8, %p4759_p5 }
  0x19   :  { %4769 = shalt.err (!%p4766_p9)
}
  0x1a   :  { %s4884_s11 = smov 512   ;;  %s4885_s12 = smov 32  }
  0x1b   :  { %60 = dma.hbm_to_vmem [thread:$0]  %s5054_s3, 32768, %s55_s9, [#allocation9], %s4884_s11, %s4884_s11, %s4885_s12  }
  0x1c   :  { %s4886_s15 = smov [#allocation2]   ;;  %s4887_s17 = smov [#allocation7]  }
  0x1d   :  { %s23_s16 = sshll.u32 %s4886_s15, 4  ;;  %s45_s1 = sshll.u32 %s4887_s17, 4  ;;  %s24_s16 = int_to_ptr.vmem [resolvable:$true] %s23_s16  ;;  %s46_s1 = int_to_ptr.vmem [resolvable:$true] %s45_s1 }
  0x1e   :  { %s4778_s18 = scalar_lea.vmem %s24_s16, 128  ;;  %p4783_p11 = scmp.lt.s32.totalorder %s24_s16, %s24_s16 }
  0x1f   :  { %p4779_p10 = scmp.ne.s32.totalorder %s24_s16, %s4778_s18  ;;  %p4784_p12 = scmp.lt.s32.totalorder %s4778_s18, %s4778_s18 }
  0x21   :  { %p4785_p13 = por %p4784_p12, %p4783_p11 }
  0x23   :  { %p4786_p0 = pnand %p4785_p13, %p4779_p10 }
  0x25   :  { %4789 = shalt.err (!%p4786_p0)
}
  0x26   :  { %26 = dma.hbm_to_vmem [thread:$0]  %s5051_s0, 128, %s24_s16, [#allocation3]  }
  0x27   :  { %s4798_s21 = scalar_lea.vmem %s46_s1, 64  ;;  %p4803_p2 = scmp.lt.s32.totalorder %s46_s1, %s46_s1 }
  0x28   :  { %p4799_p1 = scmp.ne.s32.totalorder %s46_s1, %s4798_s21  ;;  %p4804_p3 = scmp.lt.s32.totalorder %s4798_s21, %s4798_s21 }
  0x2a   :  { %p4805_p4 = por %p4804_p3, %p4803_p2 }
  0x2c   :  { %p4806_p5 = pnand %p4805_p4, %p4799_p1 }
  0x2e   :  { %4809 = shalt.err (!%p4806_p5)
}
  0x2f   :  { %48 = dma.hbm_to_vmem [thread:$0]  %s5053_s2, 64, %s46_s1, [#allocation6]  }
  0x30   :  { %s4888_s23 = smov [#allocation10]   ;;  %s4889_s25 = smov [#allocation11]  }
  0x31   :  { %s67_s24 = sshll.u32 %s4888_s23, 4  ;;  %s76_s26 = sshll.u32 %s4889_s25, 4  ;;  %s68_s24 = int_to_ptr.vmem [resolvable:$true] %s67_s24  ;;  %s77_s26 = int_to_ptr.vmem [resolvable:$true] %s76_s26 }
  0x32   :  { %s4818_s27 = scalar_lea.vmem %s68_s24, 128  ;;  %p4823_p7 = scmp.lt.s32.totalorder %s68_s24, %s68_s24 }
  0x33   :  { %p4819_p6 = scmp.ne.s32.totalorder %s68_s24, %s4818_s27  ;;  %p4824_p8 = scmp.lt.s32.totalorder %s4818_s27, %s4818_s27 }
  0x35   :  { %p4825_p9 = por %p4824_p8, %p4823_p7 }
  0x37   :  { %p4826_p10 = pnand %p4825_p9, %p4819_p6 }
  0x39   :  { %4829 = shalt.err (!%p4826_p10)
}
  0x3a   :  { %70 = dma.hbm_to_vmem [thread:$0]  %s5055_s4, 128, %s68_s24, [#allocation9]  }
  0x3b   :  { %s4838_s29 = scalar_lea.vmem %s77_s26, 24576  ;;  %p4843_p12 = scmp.lt.s32.totalorder %s77_s26, %s77_s26 }
  0x3c   :  { %p4839_p11 = scmp.ne.s32.totalorder %s77_s26, %s4838_s29  ;;  %p4844_p13 = scmp.lt.s32.totalorder %s4838_s29, %s4838_s29 }
  0x3e   :  { %p4845_p0 = por %p4844_p13, %p4843_p12 }
  0x40   :  { %p4846_p1 = pnand %p4845_p0, %p4839_p11 }
  0x42   :  { %4849 = shalt.err (!%p4846_p1)
}
  0x43   :  { %s4890_s2 = smov 192   ;;  %s4891_s30 = smov 12  }
  0x44   :  { %82 = dma.hbm_to_vmem [thread:$0]  %s5056_s5, 24576, %s77_s26, [#allocation12], %s4890_s2, %s4890_s2, %s4891_s30  }
  0x45   :  { %4870 = dma.done.wait [#allocation3], 128  }
  0x46   :  { %4871 = vsyncadd [#allocation3], 4294967168 }
  0x47   :  { %4872 = dma.done.wait [#allocation6], 2112  }
  0x48   :  { %4873 = vsyncadd [#allocation6], 4294965184 }
  0x49   :  { %4874 = dma.done.wait [#allocation9], 32896  }
  0x4a   :  { %4875 = vsyncadd [#allocation9], 4294934400 }
  0x4b   :  { %4876 = dma.done.wait [#allocation12], 24576  }
  0x4c   :  { %4877 = vsyncadd [#allocation12], 4294942720  ;;  %v4892_v0 = vmov 0   ;;  %v4450_v1 = vld [vmem:[#allocation5 + $0x64] ss:$16 sps:$4 sm:$0xff]   ;;  %v104_v20 = vld [vmem:[#allocation2] sm:$0xff] }
  0x4d   :  { %260 = vmatprep.mubr.bf16.mxu0 %v4892_v0  ;;  %301 = vmatprep.mubr.bf16.mxu1 %v4892_v0  ;;  %v4452_v2 = vld [vmem:[#allocation5 + $0x6c] ss:$16 sps:$4 sm:$0xff]   ;;  %v4454_v3 = vld [vmem:[#allocation5 + $0x60] ss:$16 sps:$4 sm:$0xff]   ;;  %v4455_v4 = vld [vmem:[#allocation5 + $0x68] ss:$16 sps:$4 sm:$0xff]   ;;  %v105_v28 = vpack.c.bf16 %v104_v20, %v104_v20 }
  0x4e   :  { %236 = vmatprep.subr.bf16.mxu0 %v4450_v1  ;;  %277 = vmatprep.subr.bf16.mxu1 %v4452_v2  ;;  %v4456_v5 = vld [vmem:[#allocation5 + $0x44] ss:$16 sps:$4 sm:$0xff]   ;;  %v4458_v6 = vld [vmem:[#allocation5 + $0x4c] ss:$16 sps:$4 sm:$0xff]   ;;  %v4460_v7 = vld [vmem:[#allocation5 + $0x40] ss:$16 sps:$4 sm:$0xff]  }
  0x4f   :  { %237 = vmatpush1.bf16.msra.mxu0 %v4454_v3  ;;  %278 = vmatpush1.bf16.msra.mxu1 %v4455_v4  ;;  %v4461_v8 = vld [vmem:[#allocation5 + $0x48] ss:$16 sps:$4 sm:$0xff]   ;;  %v4462_v9 = vld [vmem:[#allocation5 + $0x24] ss:$16 sps:$4 sm:$0xff]   ;;  %v4464_v10 = vld [vmem:[#allocation5 + $0x2c] ss:$16 sps:$4 sm:$0xff]  }
  0x50   :  { %238 = vmatprep.subr.bf16.mxu0 %v4456_v5  ;;  %279 = vmatprep.subr.bf16.mxu1 %v4458_v6  ;;  %v4466_v11 = vld [vmem:[#allocation5 + $0x20] ss:$16 sps:$4 sm:$0xff]   ;;  %v4467_v12 = vld [vmem:[#allocation5 + $0x28] ss:$16 sps:$4 sm:$0xff]   ;;  %v4468_v13 = vld [vmem:[#allocation5 + $0x4] ss:$16 sps:$4 sm:$0xff]  }
  0x51   :  { %v4470_v14 = vld [vmem:[#allocation5 + $0xc] ss:$16 sps:$4 sm:$0xff]   ;;  %v4472_v15 = vld [vmem:[#allocation5] ss:$16 sps:$4 sm:$0xff]   ;;  %v374_v16 = vld [vmem:[#allocation8 + $0x1c0] sm:$0xff]  ;;  %vm224_vm0 = vcmask 523264  }
  0x52   :  { %v378_v17 = vld [vmem:[#allocation8 + $0x1e0] sm:$0xff] }
  0x53   :  { %239 = vmatpush1.bf16.msra.mxu0 %v4460_v7  ;;  %280 = vmatpush1.bf16.msra.mxu1 %v4461_v8  ;;  %v502_v18 = vld [vmem:[#allocation8 + $0x5c0] sm:$0xff]  ;;  %v3957_v22 = vcombine.high %v374_v16, %v378_v17  ;;  %v3956_v29 = vcombine.low %v374_v16, %v378_v17 }
  0x54   :  { %240 = vmatprep.subr.bf16.mxu0 %v4462_v9  ;;  %281 = vmatprep.subr.bf16.mxu1 %v4464_v10  ;;  %v4473_v19 = vld [vmem:[#allocation5 + $0x8] ss:$16 sps:$4 sm:$0xff]  }
  0x55   :  { %v506_v21 = vld [vmem:[#allocation8 + $0x5e0] sm:$0xff] }
  0x56   :  { %v4085_v23 = vcombine.high %v502_v18, %v506_v21  ;;  %v366_v24 = vld [vmem:[#allocation8 + $0x180] sm:$0xff]  ;;  %v4084_v30 = vcombine.low %v502_v18, %v506_v21 }
  0x57   :  { %241 = vmatpush1.bf16.msra.mxu0 %v4466_v11  ;;  %282 = vmatpush1.bf16.msra.mxu1 %v4467_v12  ;;  %v370_v25 = vld [vmem:[#allocation8 + $0x1a0] sm:$0xff] }
  0x58   :  { %242 = vmatprep.subr.bf16.mxu0 %v4468_v13  ;;  %283 = vmatprep.subr.bf16.mxu1 %v4470_v14  ;;  %v494_v26 = vld [vmem:[#allocation8 + $0x580] sm:$0xff]  ;;  %v3949_v31 = vcombine.high %v366_v24, %v370_v25  ;;  %v3948_v37 = vcombine.low %v366_v24, %v370_v25 }
  0x59   :  { %v498_v27 = vld [vmem:[#allocation8 + $0x5a0] sm:$0xff] }
  0x5a   :  { %v4077_v32 = vcombine.high %v494_v26, %v498_v27  ;;  %v358_v33 = vld [vmem:[#allocation8 + $0x140] sm:$0xff]  ;;  %v4076_v38 = vcombine.low %v494_v26, %v498_v27 }
  0x5b   :  { %243 = vmatpush1.bf16.msra.mxu0 %v4472_v15  ;;  %284 = vmatpush1.bf16.msra.mxu1 %v4473_v19  ;;  %v362_v34 = vld [vmem:[#allocation8 + $0x160] sm:$0xff] }
  0x5c   :  { %1896 = vmatprep.subr.bf16.mxu0 %v3957_v22  ;;  %1937 = vmatprep.subr.bf16.mxu1 %v4085_v23  ;;  %v486_v35 = vld [vmem:[#allocation8 + $0x540] sm:$0xff]  ;;  %v3941_v39 = vcombine.high %v358_v33, %v362_v34  ;;  %v3940_v45 = vcombine.low %v358_v33, %v362_v34 }
  0x5d   :  { %v490_v36 = vld [vmem:[#allocation8 + $0x560] sm:$0xff] }
  0x5e   :  { %3898 = vmatmul.mubr.msk.bf16.vlgmr.msra.gmra.mxu0 %vm224_vm0, %v105_v28  ;;  %3899 = vmatmul.mubr.msk.bf16.vlgmr.msra.gmra.mxu1 %vm224_vm0, %v105_v28  ;;  %v4069_v40 = vcombine.high %v486_v35, %v490_v36  ;;  %v350_v41 = vld [vmem:[#allocation8 + $0x100] sm:$0xff]  ;;  %v4068_v46 = vcombine.low %v486_v35, %v490_v36 }
  0x5f   :  { %1897 = vmatpush1.bf16.msra.mxu0 %v3956_v29  ;;  %1938 = vmatpush1.bf16.msra.mxu1 %v4084_v30  ;;  %v354_v42 = vld [vmem:[#allocation8 + $0x120] sm:$0xff] }
  0x60   :  { %1898 = vmatprep.subr.bf16.mxu0 %v3949_v31  ;;  %1939 = vmatprep.subr.bf16.mxu1 %v4077_v32  ;;  %v478_v43 = vld [vmem:[#allocation8 + $0x500] sm:$0xff]  ;;  %v3933_v47 = vcombine.high %v350_v41, %v354_v42  ;;  %v3932_v53 = vcombine.low %v350_v41, %v354_v42 }
  0x61   :  { %v482_v44 = vld [vmem:[#allocation8 + $0x520] sm:$0xff] }
  0x62   :  { %v4061_v48 = vcombine.high %v478_v43, %v482_v44  ;;  %v342_v49 = vld [vmem:[#allocation8 + $0xc0] sm:$0xff]  ;;  %v4060_v54 = vcombine.low %v478_v43, %v482_v44 }
  0x63   :  { %1899 = vmatpush1.bf16.msra.mxu0 %v3948_v37  ;;  %1940 = vmatpush1.bf16.msra.mxu1 %v4076_v38  ;;  %v346_v50 = vld [vmem:[#allocation8 + $0xe0] sm:$0xff] }
  0x64   :  { %1900 = vmatprep.subr.bf16.mxu0 %v3941_v39  ;;  %1941 = vmatprep.subr.bf16.mxu1 %v4069_v40  ;;  %v470_v51 = vld [vmem:[#allocation8 + $0x4c0] sm:$0xff]  ;;  %v3925_v56 = vcombine.high %v342_v49, %v346_v50  ;;  %v3924_v61 = vcombine.low %v342_v49, %v346_v50 }
  0x65   :  { %v474_v52 = vld [vmem:[#allocation8 + $0x4e0] sm:$0xff] }
  0x66   :  { %v334_v55 = vld [vmem:[#allocation8 + $0x80] sm:$0xff]  ;;  %v4053_v57 = vcombine.high %v470_v51, %v474_v52  ;;  %v4052_v62 = vcombine.low %v470_v51, %v474_v52 }
  0x67   :  { %1901 = vmatpush1.bf16.msra.mxu0 %v3940_v45  ;;  %1942 = vmatpush1.bf16.msra.mxu1 %v4068_v46  ;;  %v338_v58 = vld [vmem:[#allocation8 + $0xa0] sm:$0xff] }
  0x68   :  { %1902 = vmatprep.subr.bf16.mxu0 %v3933_v47  ;;  %1943 = vmatprep.subr.bf16.mxu1 %v4061_v48  ;;  %v462_v59 = vld [vmem:[#allocation8 + $0x480] sm:$0xff]  ;;  %v3917_v3 = vcombine.high %v334_v55, %v338_v58  ;;  %v3916_v5 = vcombine.low %v334_v55, %v338_v58 }
  0x69   :  { %v466_v60 = vld [vmem:[#allocation8 + $0x4a0] sm:$0xff] }
  0x6a   :  { %v326_v63 = vld [vmem:[#allocation8 + $0x40] sm:$0xff]  ;;  %v4045_v4 = vcombine.high %v462_v59, %v466_v60  ;;  %v4044_v6 = vcombine.low %v462_v59, %v466_v60 }
  0x6b   :  { %1903 = vmatpush1.bf16.msra.mxu0 %v3932_v53  ;;  %1944 = vmatpush1.bf16.msra.mxu1 %v4060_v54  ;;  %v330_v0 = vld [vmem:[#allocation8 + $0x60] sm:$0xff] }
  0x6c   :  { %v454_v1 = vld [vmem:[#allocation8 + $0x440] sm:$0xff]  ;;  %1904 = vmatprep.subr.bf16.mxu0 %v3925_v56  ;;  %1945 = vmatprep.subr.bf16.mxu1 %v4053_v57  ;;  %v3909_v11 = vcombine.high %v326_v63, %v330_v0  ;;  %v3908_v13 = vcombine.low %v326_v63, %v330_v0 }
  0x6d   :  { %v458_v2 = vld [vmem:[#allocation8 + $0x460] sm:$0xff] }
  0x6e   :  { %v318_v7 = vld [vmem:[#allocation8] sm:$0xff]  ;;  %v4037_v12 = vcombine.high %v454_v1, %v458_v2  ;;  %v4036_v14 = vcombine.low %v454_v1, %v458_v2 }
  0x6f   :  { %1905 = vmatpush1.bf16.msra.mxu0 %v3924_v61  ;;  %1946 = vmatpush1.bf16.msra.mxu1 %v4052_v62  ;;  %v322_v8 = vld [vmem:[#allocation8 + $0x20] sm:$0xff] }
  0x70   :  { %v446_v9 = vld [vmem:[#allocation8 + $0x400] sm:$0xff]  ;;  %1906 = vmatprep.subr.bf16.mxu0 %v3917_v3  ;;  %1947 = vmatprep.subr.bf16.mxu1 %v4045_v4  ;;  %v3901_v19 = vcombine.high %v318_v7, %v322_v8  ;;  %v3900_v21 = vcombine.low %v318_v7, %v322_v8 }
  0x71   :  { %v450_v10 = vld [vmem:[#allocation8 + $0x420] sm:$0xff] }
  0x72   :  { %v438_v15 = vld [vmem:[#allocation8 + $0x3c0] sm:$0xff]  ;;  %v4029_v20 = vcombine.high %v446_v9, %v450_v10  ;;  %v4028_v22 = vcombine.low %v446_v9, %v450_v10 }
  0x73   :  { %1907 = vmatpush1.bf16.msra.mxu0 %v3916_v5  ;;  %1948 = vmatpush1.bf16.msra.mxu1 %v4044_v6  ;;  %v442_v16 = vld [vmem:[#allocation8 + $0x3e0] sm:$0xff] }
  0x74   :  { %v566_v17 = vld [vmem:[#allocation8 + $0x7c0] sm:$0xff]  ;;  %1908 = vmatprep.subr.bf16.mxu0 %v3909_v11  ;;  %1949 = vmatprep.subr.bf16.mxu1 %v4037_v12  ;;  %v4021_v27 = vcombine.high %v438_v15, %v442_v16  ;;  %v4020_v29 = vcombine.low %v438_v15, %v442_v16 }
  0x75   :  { %v570_v18 = vld [vmem:[#allocation8 + $0x7e0] sm:$0xff] }
  0x76   :  { %v430_v23 = vld [vmem:[#allocation8 + $0x380] sm:$0xff]  ;;  %v4149_v28 = vcombine.high %v566_v17, %v570_v18  ;;  %v4148_v30 = vcombine.low %v566_v17, %v570_v18 }
  0x77   :  { %1909 = vmatpush1.bf16.msra.mxu0 %v3908_v13  ;;  %1950 = vmatpush1.bf16.msra.mxu1 %v4036_v14  ;;  %v434_v24 = vld [vmem:[#allocation8 + $0x3a0] sm:$0xff] }
  0x78   :  { %v558_v25 = vld [vmem:[#allocation8 + $0x780] sm:$0xff]  ;;  %1910 = vmatprep.subr.bf16.mxu0 %v3901_v19  ;;  %1951 = vmatprep.subr.bf16.mxu1 %v4029_v20  ;;  %v4013_v35 = vcombine.high %v430_v23, %v434_v24  ;;  %v4012_v37 = vcombine.low %v430_v23, %v434_v24  ;;  %v375_v19 = vld [vmem:[#allocation8 + $0x1c8] sm:$0xff] }
  0x79   :  { %v562_v26 = vld [vmem:[#allocation8 + $0x7a0] sm:$0xff]  ;;  %v379_v20 = vld [vmem:[#allocation8 + $0x1e8] sm:$0xff] }
  0x7a   :  { %v422_v31 = vld [vmem:[#allocation8 + $0x340] sm:$0xff]  ;;  %v4141_v36 = vcombine.high %v558_v25, %v562_v26  ;;  %v4140_v38 = vcombine.low %v558_v25, %v562_v26  ;;  %v507_v23 = vld [vmem:[#allocation8 + $0x5e8] sm:$0xff]  ;;  %v3958_v24 = vcombine.low %v375_v19, %v379_v20 }
  0x7b   :  { %1911 = vmatpush1.bf16.msra.mxu0 %v3900_v21  ;;  %1952 = vmatpush1.bf16.msra.mxu1 %v4028_v22  ;;  %v426_v32 = vld [vmem:[#allocation8 + $0x360] sm:$0xff]  ;;  %v503_v21 = vld [vmem:[#allocation8 + $0x5c8] sm:$0xff]  ;;  %v3959_v22 = vcombine.high %v375_v19, %v379_v20 }
  0x7c   :  { %v550_v33 = vld [vmem:[#allocation8 + $0x740] sm:$0xff]  ;;  %1912 = vmatprep.subr.bf16.mxu0 %v4021_v27  ;;  %1953 = vmatprep.subr.bf16.mxu1 %v4149_v28  ;;  %v4005_v43 = vcombine.high %v422_v31, %v426_v32  ;;  %v4004_v45 = vcombine.low %v422_v31, %v426_v32  ;;  %v4086_v25 = vcombine.low %v503_v21, %v507_v23  ;;  %v124_v27 = vlaneseq  ;;  %v122_v31 = vld [vmem:[#allocation7] sm:$0xf]  ;;  %v475_v19 = vld [vmem:[#allocation8 + $0x4e8] sm:$0xff] }
  0x7d   :  { %v554_v34 = vld [vmem:[#allocation8 + $0x760] sm:$0xff]  ;;  %v4087_v26 = vcombine.high %v503_v21, %v507_v23 }
  0x7e   :  { %v414_v39 = vld [vmem:[#allocation8 + $0x300] sm:$0xff]  ;;  %v4133_v44 = vcombine.high %v550_v33, %v554_v34  ;;  %v4132_v46 = vcombine.low %v550_v33, %v554_v34  ;;  %v4952_v28 = vshrl.u32 %v124_v27, 7  ;;  %v467_v27 = vld [vmem:[#allocation8 + $0x4a8] sm:$0xff] }
  0x7f   :  { %1913 = vmatpush2.bf16.msra.mxu0 %v4020_v29  ;;  %1954 = vmatpush2.bf16.msra.mxu1 %v4148_v30  ;;  %v418_v40 = vld [vmem:[#allocation8 + $0x320] sm:$0xff] }
  0x80   :  { %v542_v41 = vld [vmem:[#allocation8 + $0x700] sm:$0xff]  ;;  %1914 = vmatprep.subr.bf16.mxu0 %v4013_v35  ;;  %1955 = vmatprep.subr.bf16.mxu1 %v4141_v36  ;;  %v3997_v51 = vcombine.high %v414_v39, %v418_v40  ;;  %v3996_v53 = vcombine.low %v414_v39, %v418_v40  ;;  %v4955_v29 = vsub.s32 0, %v4952_v28  ;;  %v4958_v30 = vsub.s32 2, %v4952_v28 }
  0x81   :  { %v546_v42 = vld [vmem:[#allocation8 + $0x720] sm:$0xff]  ;;  %v4961_v32 = vsub.s32 1, %v4952_v28  ;;  %v138_v33 = vsub.s32 3, %v4952_v28 }
  0x82   :  { %v406_v47 = vld [vmem:[#allocation8 + $0x2c0] sm:$0xff]  ;;  %v4125_v52 = vcombine.high %v542_v41, %v546_v42  ;;  %v4124_v54 = vcombine.low %v542_v41, %v546_v42  ;;  %v127_v34 = vrot.slane %v122_v31, %v4955_v29  ;;  %v135_v35 = vrot.slane %v122_v31, %v4958_v30 }
  0x83   :  { %1915 = vmatpush2.bf16.msra.mxu0 %v4012_v37  ;;  %1956 = vmatpush2.bf16.msra.mxu1 %v4140_v38  ;;  %v410_v48 = vld [vmem:[#allocation8 + $0x2e0] sm:$0xff]  ;;  %v131_v36 = vrot.slane %v122_v31, %v4961_v32  ;;  %v139_v37 = vrot.slane %v122_v31, %v138_v33 }
  0x84   :  { %v534_v49 = vld [vmem:[#allocation8 + $0x6c0] sm:$0xff]  ;;  %1916 = vmatprep.subr.bf16.mxu0 %v4005_v43  ;;  %1957 = vmatprep.subr.bf16.mxu1 %v4133_v44  ;;  %v3989_v59 = vcombine.high %v406_v47, %v410_v48  ;;  %v3988_v61 = vcombine.low %v406_v47, %v410_v48 }
  0x85   :  { %v538_v50 = vld [vmem:[#allocation8 + $0x6e0] sm:$0xff] }
  0x86   :  { %v398_v55 = vld [vmem:[#allocation8 + $0x280] sm:$0xff]  ;;  %v4117_v60 = vcombine.high %v534_v49, %v538_v50  ;;  %v4116_v62 = vcombine.low %v534_v49, %v538_v50 }
  0x87   :  { %1917 = vmatpush2.bf16.msra.mxu0 %v4004_v45  ;;  %1958 = vmatpush2.bf16.msra.mxu1 %v4132_v46  ;;  %v402_v56 = vld [vmem:[#allocation8 + $0x2a0] sm:$0xff] }
  0x88   :  { %v526_v57 = vld [vmem:[#allocation8 + $0x680] sm:$0xff]  ;;  %1918 = vmatprep.subr.bf16.mxu0 %v3997_v51  ;;  %1959 = vmatprep.subr.bf16.mxu1 %v4125_v52  ;;  %v3981_v63 = vcombine.high %v398_v55, %v402_v56  ;;  %v3980_v1 = vcombine.low %v398_v55, %v402_v56  ;;  %v367_v52 = vld [vmem:[#allocation8 + $0x188] sm:$0xff] }
  0x89   :  { %v530_v58 = vld [vmem:[#allocation8 + $0x6a0] sm:$0xff]  ;;  %v371_v56 = vld [vmem:[#allocation8 + $0x1a8] sm:$0xff] }
  0x8a   :  { %v4109_v0 = vcombine.high %v526_v57, %v530_v58  ;;  %v4108_v2 = vcombine.low %v526_v57, %v530_v58  ;;  %v390_v3 = vld [vmem:[#allocation8 + $0x240] sm:$0xff]  ;;  %v495_v57 = vld [vmem:[#allocation8 + $0x588] sm:$0xff] }
  0x8b   :  { %1919 = vmatpush2.bf16.msra.mxu0 %v3996_v53  ;;  %1960 = vmatpush2.bf16.msra.mxu1 %v4124_v54  ;;  %v394_v4 = vld [vmem:[#allocation8 + $0x260] sm:$0xff]  ;;  %v499_v58 = vld [vmem:[#allocation8 + $0x5a8] sm:$0xff] }
  0x8c   :  { %1920 = vmatprep.subr.bf16.mxu0 %v3989_v59  ;;  %1961 = vmatprep.subr.bf16.mxu1 %v4117_v60  ;;  %v518_v5 = vld [vmem:[#allocation8 + $0x640] sm:$0xff]  ;;  %v3973_v6 = vcombine.high %v390_v3, %v394_v4  ;;  %v3972_v8 = vcombine.low %v390_v3, %v394_v4  ;;  %v491_v3 = vld [vmem:[#allocation8 + $0x568] sm:$0xff]  ;;  %v3950_v4 = vcombine.low %v367_v52, %v371_v56 }
  0x8d   :  { %v522_v7 = vld [vmem:[#allocation8 + $0x660] sm:$0xff] }
  0x8e   :  { %v4100_v9 = vcombine.low %v518_v5, %v522_v7  ;;  %v4101_v10 = vcombine.high %v518_v5, %v522_v7  ;;  %v382_v11 = vld [vmem:[#allocation8 + $0x200] sm:$0xff]  ;;  %v4078_v5 = vcombine.low %v495_v57, %v499_v58 }
  0x8f   :  { %1921 = vmatpush2.bf16.msra.mxu0 %v3988_v61  ;;  %1962 = vmatpush2.bf16.msra.mxu1 %v4116_v62  ;;  %v386_v12 = vld [vmem:[#allocation8 + $0x220] sm:$0xff]  ;;  %v359_v62 = vld [vmem:[#allocation8 + $0x148] sm:$0xff] }
  0x90   :  { %1922 = vmatprep.subr.bf16.mxu0 %v3981_v63  ;;  %1963 = vmatprep.subr.bf16.mxu1 %v4109_v0  ;;  %v510_v13 = vld [vmem:[#allocation8 + $0x600] sm:$0xff]  ;;  %v3965_v14 = vcombine.high %v382_v11, %v386_v12  ;;  %v3964_v16 = vcombine.low %v382_v11, %v386_v12  ;;  %v3951_v63 = vcombine.high %v367_v52, %v371_v56  ;;  %v483_v11 = vld [vmem:[#allocation8 + $0x528] sm:$0xff] }
  0x91   :  { %v514_v15 = vld [vmem:[#allocation8 + $0x620] sm:$0xff]  ;;  %v4079_v0 = vcombine.high %v495_v57, %v499_v58  ;;  %v567_v56 = vld [vmem:[#allocation8 + $0x7c8] sm:$0xff] }
  0x92   :  { %v4092_v17 = vcombine.low %v510_v13, %v514_v15  ;;  %v4093_v18 = vcombine.high %v510_v13, %v514_v15  ;;  %v571_v57 = vld [vmem:[#allocation8 + $0x7e8] sm:$0xff] }
  0x93   :  { %1923 = vmatpush2.bf16.msra.mxu0 %v3980_v1  ;;  %1964 = vmatpush2.bf16.msra.mxu1 %v4108_v2  ;;  %v363_v1 = vld [vmem:[#allocation8 + $0x168] sm:$0xff] }
  0x94   :  { %1924 = vmatprep.subr.bf16.mxu0 %v3973_v6  ;;  %1965 = vmatprep.subr.bf16.mxu1 %v4101_v10  ;;  %v487_v2 = vld [vmem:[#allocation8 + $0x548] sm:$0xff]  ;;  %v3943_v6 = vcombine.high %v359_v62, %v363_v1  ;;  %v3942_v12 = vcombine.low %v359_v62, %v363_v1 }
  0x95   :  { %v4071_v7 = vcombine.high %v487_v2, %v491_v3  ;;  %v479_v10 = vld [vmem:[#allocation8 + $0x508] sm:$0xff]  ;;  %v4070_v13 = vcombine.low %v487_v2, %v491_v3 }
  0x96   :  { %v4063_v15 = vcombine.high %v479_v10, %v483_v11  ;;  %v4062_v21 = vcombine.low %v479_v10, %v483_v11  ;;  %v431_v1 = vld [vmem:[#allocation8 + $0x388] sm:$0xff] }
  0x97   :  { %1925 = vmatpush2.bf16.msra.mxu0 %v3972_v8  ;;  %1966 = vmatpush2.bf16.msra.mxu1 %v4100_v9  ;;  %v351_v8 = vld [vmem:[#allocation8 + $0x108] sm:$0xff] }
  0x98   :  { %1926 = vmatprep.subr.bf16.mxu0 %v3965_v14  ;;  %1967 = vmatprep.subr.bf16.mxu1 %v4093_v18  ;;  %v355_v9 = vld [vmem:[#allocation8 + $0x128] sm:$0xff] }
  0x99   :  { %v3935_v14 = vcombine.high %v351_v8, %v355_v9  ;;  %v471_v18 = vld [vmem:[#allocation8 + $0x4c8] sm:$0xff]  ;;  %v3934_v20 = vcombine.low %v351_v8, %v355_v9 }
  0x9a   :  { %v4055_v23 = vcombine.high %v471_v18, %v475_v19  ;;  %v435_v2 = vld [vmem:[#allocation8 + $0x3a8] sm:$0xff] }
  0x9b   :  { %1927 = vmatpush2.bf16.msra.mxu0 %v3964_v16  ;;  %1968 = vmatpush2.bf16.msra.mxu1 %v4092_v17  ;;  %v343_v16 = vld [vmem:[#allocation8 + $0xc8] sm:$0xff] }
  0x9c   :  { %1978 = vmatprep.subr.bf16.mxu0 %v3959_v22  ;;  %2019 = vmatprep.subr.bf16.mxu1 %v4087_v26  ;;  %v347_v17 = vld [vmem:[#allocation8 + $0xe8] sm:$0xff] }
  0x9d   :  { %v3927_v22 = vcombine.high %v343_v16, %v347_v17  ;;  %v463_v26 = vld [vmem:[#allocation8 + $0x488] sm:$0xff]  ;;  %v3926_v31 = vcombine.low %v343_v16, %v347_v17 }
  0x9e   :  { %v559_v3 = vld [vmem:[#allocation8 + $0x788] sm:$0xff] }
  0x9f   :  { %v423_v9 = vld [vmem:[#allocation8 + $0x348] sm:$0xff] }
  0xa0   :  { %v427_v10 = vld [vmem:[#allocation8 + $0x368] sm:$0xff] }
  0xa1   :  { %v551_v11 = vld [vmem:[#allocation8 + $0x748] sm:$0xff] }
  0xa2   :  { %v415_v17 = vld [vmem:[#allocation8 + $0x308] sm:$0xff] }
 0x11e   :  { %v262_v38 = vpop.f32.mrf.mxu0  ;;  %v303_v39 = vpop.f32.mrf.mxu1 }
 0x11f   :  { %v263_v40 = vadd.f32 %v262_v38, %v127_v34  ;;  %v304_v41 = vadd.f32 %v303_v39, %v135_v35  ;;  %v4054_v34 = vcombine.low %v471_v18, %v475_v19  ;;  %v331_v38 = vld [vmem:[#allocation8 + $0x68] sm:$0xff] }
 0x120   :  { %v264_v42 = vpop.f32.mrf.mxu0  ;;  %v305_v43 = vpop.f32.mrf.mxu1  ;;  %v455_v39 = vld [vmem:[#allocation8 + $0x448] sm:$0xff] }
 0x121   :  { %v312_v44 = vmax.f32 %v304_v41, 0.0  ;;  %v265_v45 = vadd.f32 %v264_v42, %v131_v36  ;;  %v306_v46 = vadd.f32 %v305_v43, %v139_v37  ;;  %v310_v47 = vmax.f32 %v263_v40, 0.0  ;;  %v327_v37 = vld [vmem:[#allocation8 + $0x48] sm:$0xff] }
 0x122   :  { %v266_v48 = vpop.f32.mrf.mxu0  ;;  %v307_v49 = vpop.f32.mrf.mxu1  ;;  %v4047_v36 = vcombine.high %v463_v26, %v467_v27  ;;  %v459_v40 = vld [vmem:[#allocation8 + $0x468] sm:$0xff]  ;;  %v4046_v42 = vcombine.low %v463_v26, %v467_v27  ;;  %v3911_v43 = vcombine.high %v327_v37, %v331_v38 }
 0x123   :  { %v311_v50 = vmax.f32 %v265_v45, 0.0  ;;  %v313_v51 = vmax.f32 %v306_v46, 0.0  ;;  %v4969_v53 = vpack.c.bf16 %v312_v44, %v312_v44  ;;  %v4975_v61 = vpack.c.bf16 %v310_v47, %v310_v47  ;;  %v319_v45 = vld [vmem:[#allocation8 + $0x8] sm:$0xff] }
 0x124   :  { %v267_v54 = vpop.f32.mrf.mxu0  ;;  %v308_v55 = vpop.f32.mrf.mxu1  ;;  %v4039_v44 = vcombine.high %v455_v39, %v459_v40  ;;  %v323_v46 = vld [vmem:[#allocation8 + $0x28] sm:$0xff]  ;;  %v3910_v49 = vcombine.low %v327_v37, %v331_v38 }
 0x125   :  { %v4971_v59 = vpack.c.bf16 %v311_v50, %v311_v50  ;;  %v4973_v60 = vpack.c.bf16 %v313_v51, %v313_v51  ;;  %v447_v47 = vld [vmem:[#allocation8 + $0x408] sm:$0xff]  ;;  %v4038_v50 = vcombine.low %v455_v39, %v459_v40  ;;  %v3903_v51 = vcombine.high %v319_v45, %v323_v46 }
 0x126   :  { %v451_v48 = vld [vmem:[#allocation8 + $0x428] sm:$0xff]  ;;  %v3902_v58 = vcombine.low %v319_v45, %v323_v46 }
 0x127   :  { %1928 = vmatprep.mubr.bf16.mxu0 %v4971_v59  ;;  %1969 = vmatprep.mubr.bf16.mxu1 %v4973_v60  ;;  %v4031_v52 = vcombine.high %v447_v47, %v451_v48  ;;  %v439_v54 = vld [vmem:[#allocation8 + $0x3c8] sm:$0xff]  ;;  %v4030_v62 = vcombine.low %v447_v47, %v451_v48 }
 0x128   :  { %1929 = vmatmul.mubr.bf16.vlgmr.msra.gmra.mxu0 %v4975_v61  ;;  %1970 = vmatmul.mubr.bf16.vlgmr.msra.gmra.mxu1 %v4969_v53  ;;  %v443_v55 = vld [vmem:[#allocation8 + $0x3e8] sm:$0xff] }
 0x129   :  { %1979 = vmatpush1.bf16.msra.mxu0 %v3958_v24  ;;  %2020 = vmatpush1.bf16.msra.mxu1 %v4086_v25  ;;  %v335_v24 = vld [vmem:[#allocation8 + $0x88] sm:$0xff] }
 0x12a   :  { %2010 = vmatprep.mubr.bf16.mxu0 %v4971_v59  ;;  %2051 = vmatprep.mubr.bf16.mxu1 %v4973_v60  ;;  %v339_v25 = vld [vmem:[#allocation8 + $0xa8] sm:$0xff] }
 0x12b   :  { %1980 = vmatprep.subr.bf16.mxu0 %v3951_v63  ;;  %2021 = vmatprep.subr.bf16.mxu1 %v4079_v0  ;;  %v3919_v35 = vcombine.high %v335_v24, %v339_v25  ;;  %v3918_v41 = vcombine.low %v335_v24, %v339_v25  ;;  %v4023_v63 = vcombine.high %v439_v54, %v443_v55  ;;  %v419_v18 = vld [vmem:[#allocation8 + $0x328] sm:$0xff] }
 0x12c   :  { %v4151_v0 = vcombine.high %v567_v56, %v571_v57  ;;  %v543_v19 = vld [vmem:[#allocation8 + $0x708] sm:$0xff] }
 0x12d   :  { %1981 = vmatpush1.bf16.msra.mxu0 %v3950_v4  ;;  %2022 = vmatpush1.bf16.msra.mxu1 %v4078_v5  ;;  %v563_v4 = vld [vmem:[#allocation8 + $0x7a8] sm:$0xff]  ;;  %v4022_v5 = vcombine.low %v439_v54, %v443_v55 }
 0x12e   :  { %1982 = vmatprep.subr.bf16.mxu0 %v3943_v6  ;;  %2023 = vmatprep.subr.bf16.mxu1 %v4071_v7  ;;  %v4150_v6 = vcombine.low %v567_v56, %v571_v57  ;;  %v4015_v7 = vcombine.high %v431_v1, %v435_v2  ;;  %v4143_v8 = vcombine.high %v559_v3, %v563_v4  ;;  %v407_v25 = vld [vmem:[#allocation8 + $0x2c8] sm:$0xff] }
 0x12f   :  { %v411_v26 = vld [vmem:[#allocation8 + $0x2e8] sm:$0xff] }
 0x130   :  { %v535_v27 = vld [vmem:[#allocation8 + $0x6c8] sm:$0xff] }
 0x131   :  { %1983 = vmatpush1.bf16.msra.mxu0 %v3942_v12  ;;  %2024 = vmatpush1.bf16.msra.mxu1 %v4070_v13  ;;  %v555_v12 = vld [vmem:[#allocation8 + $0x768] sm:$0xff]  ;;  %v4014_v13 = vcombine.low %v431_v1, %v435_v2  ;;  %v376_v2 = vld [vmem:[#allocation8 + $0x1d0] sm:$0xff] }
 0x132   :  { %1984 = vmatprep.subr.bf16.mxu0 %v3935_v14  ;;  %2025 = vmatprep.subr.bf16.mxu1 %v4063_v15  ;;  %v4142_v14 = vcombine.low %v559_v3, %v563_v4  ;;  %v4007_v15 = vcombine.high %v423_v9, %v427_v10  ;;  %v4135_v16 = vcombine.high %v551_v11, %v555_v12  ;;  %v399_v38 = vld [vmem:[#allocation8 + $0x288] sm:$0xff]  ;;  %v380_v3 = vld [vmem:[#allocation8 + $0x1f0] sm:$0xff] }
 0x133   :  { %v403_v39 = vld [vmem:[#allocation8 + $0x2a8] sm:$0xff]  ;;  %v504_v4 = vld [vmem:[#allocation8 + $0x5d0] sm:$0xff] }
 0x134   :  { %v527_v40 = vld [vmem:[#allocation8 + $0x688] sm:$0xff] }
 0x135   :  { %1985 = vmatpush1.bf16.msra.mxu0 %v3934_v20  ;;  %2026 = vmatpush1.bf16.msra.mxu1 %v4062_v21  ;;  %v547_v20 = vld [vmem:[#allocation8 + $0x728] sm:$0xff]  ;;  %v4006_v21 = vcombine.low %v423_v9, %v427_v10  ;;  %v368_v10 = vld [vmem:[#allocation8 + $0x190] sm:$0xff] }
 0x136   :  { %1986 = vmatprep.subr.bf16.mxu0 %v3927_v22  ;;  %2027 = vmatprep.subr.bf16.mxu1 %v4055_v23  ;;  %v4134_v22 = vcombine.low %v551_v11, %v555_v12  ;;  %v3999_v23 = vcombine.high %v415_v17, %v419_v18  ;;  %v4127_v24 = vcombine.high %v543_v19, %v547_v20  ;;  %v391_v46 = vld [vmem:[#allocation8 + $0x248] sm:$0xff]  ;;  %v372_v11 = vld [vmem:[#allocation8 + $0x1b0] sm:$0xff] }
 0x137   :  { %v395_v47 = vld [vmem:[#allocation8 + $0x268] sm:$0xff]  ;;  %v496_v12 = vld [vmem:[#allocation8 + $0x590] sm:$0xff] }
 0x138   :  { %v519_v48 = vld [vmem:[#allocation8 + $0x648] sm:$0xff] }
 0x139   :  { %1987 = vmatpush1.bf16.msra.mxu0 %v3926_v31  ;;  %2028 = vmatpush1.bf16.msra.mxu1 %v4054_v34  ;;  %v539_v31 = vld [vmem:[#allocation8 + $0x6e8] sm:$0xff]  ;;  %v3998_v34 = vcombine.low %v415_v17, %v419_v18  ;;  %v360_v18 = vld [vmem:[#allocation8 + $0x150] sm:$0xff] }
 0x13a   :  { %1988 = vmatprep.subr.bf16.mxu0 %v3919_v35  ;;  %2029 = vmatprep.subr.bf16.mxu1 %v4047_v36  ;;  %v4126_v35 = vcombine.low %v543_v19, %v547_v20  ;;  %v3991_v36 = vcombine.high %v407_v25, %v411_v26  ;;  %v4119_v37 = vcombine.high %v535_v27, %v539_v31  ;;  %v383_v55 = vld [vmem:[#allocation8 + $0x208] sm:$0xff]  ;;  %v364_v19 = vld [vmem:[#allocation8 + $0x170] sm:$0xff] }
 0x13b   :  { %v387_v56 = vld [vmem:[#allocation8 + $0x228] sm:$0xff]  ;;  %v488_v20 = vld [vmem:[#allocation8 + $0x550] sm:$0xff] }
 0x13c   :  { %v511_v57 = vld [vmem:[#allocation8 + $0x608] sm:$0xff] }
 0x13d   :  { %1989 = vmatpush1.bf16.msra.mxu0 %v3918_v41  ;;  %2030 = vmatpush1.bf16.msra.mxu1 %v4046_v42  ;;  %v531_v41 = vld [vmem:[#allocation8 + $0x6a8] sm:$0xff]  ;;  %v3990_v42 = vcombine.low %v407_v25, %v411_v26  ;;  %v352_v26 = vld [vmem:[#allocation8 + $0x110] sm:$0xff] }
 0x13e   :  { %1990 = vmatprep.subr.bf16.mxu0 %v3911_v43  ;;  %2031 = vmatprep.subr.bf16.mxu1 %v4039_v44  ;;  %v4118_v43 = vcombine.low %v535_v27, %v539_v31  ;;  %v3983_v44 = vcombine.high %v399_v38, %v403_v39  ;;  %v4111_v45 = vcombine.high %v527_v40, %v531_v41  ;;  %v356_v27 = vld [vmem:[#allocation8 + $0x130] sm:$0xff] }
 0x13f   :  { %v480_v31 = vld [vmem:[#allocation8 + $0x510] sm:$0xff] }
 0x141   :  { %1991 = vmatpush1.bf16.msra.mxu0 %v3910_v49  ;;  %2032 = vmatpush1.bf16.msra.mxu1 %v4038_v50  ;;  %v523_v49 = vld [vmem:[#allocation8 + $0x668] sm:$0xff]  ;;  %v3982_v50 = vcombine.low %v399_v38, %v403_v39  ;;  %v344_v39 = vld [vmem:[#allocation8 + $0xd0] sm:$0xff] }
 0x142   :  { %1992 = vmatprep.subr.bf16.mxu0 %v3903_v51  ;;  %2033 = vmatprep.subr.bf16.mxu1 %v4031_v52  ;;  %v4110_v51 = vcombine.low %v527_v40, %v531_v41  ;;  %v3975_v52 = vcombine.high %v391_v46, %v395_v47  ;;  %v4103_v54 = vcombine.high %v519_v48, %v523_v49  ;;  %v348_v40 = vld [vmem:[#allocation8 + $0xf0] sm:$0xff] }
 0x143   :  { %v472_v41 = vld [vmem:[#allocation8 + $0x4d0] sm:$0xff] }
 0x145   :  { %1993 = vmatpush1.bf16.msra.mxu0 %v3902_v58  ;;  %2034 = vmatpush1.bf16.msra.mxu1 %v4030_v62  ;;  %v515_v58 = vld [vmem:[#allocation8 + $0x628] sm:$0xff]  ;;  %v3974_v62 = vcombine.low %v391_v46, %v395_v47  ;;  %v336_v47 = vld [vmem:[#allocation8 + $0x90] sm:$0xff] }
 0x146   :  { %1994 = vmatprep.subr.bf16.mxu0 %v4023_v63  ;;  %2035 = vmatprep.subr.bf16.mxu1 %v4151_v0  ;;  %v4102_v63 = vcombine.low %v519_v48, %v523_v49  ;;  %v3967_v0 = vcombine.high %v383_v55, %v387_v56  ;;  %v4095_v1 = vcombine.high %v511_v57, %v515_v58  ;;  %v340_v48 = vld [vmem:[#allocation8 + $0xb0] sm:$0xff] }
 0x147   :  { %v464_v49 = vld [vmem:[#allocation8 + $0x490] sm:$0xff] }
 0x149   :  { %1995 = vmatpush2.bf16.msra.mxu0 %v4022_v5  ;;  %2036 = vmatpush2.bf16.msra.mxu1 %v4150_v6  ;;  %v508_v5 = vld [vmem:[#allocation8 + $0x5f0] sm:$0xff]  ;;  %v3966_v6 = vcombine.low %v383_v55, %v387_v56 }
 0x14a   :  { %1996 = vmatprep.subr.bf16.mxu0 %v4015_v7  ;;  %2037 = vmatprep.subr.bf16.mxu1 %v4143_v8  ;;  %v4094_v7 = vcombine.low %v511_v57, %v515_v58  ;;  %v3961_v8 = vcombine.high %v376_v2, %v380_v3  ;;  %v4089_v9 = vcombine.high %v504_v4, %v508_v5  ;;  %v328_v56 = vld [vmem:[#allocation8 + $0x50] sm:$0xff] }
 0x14b   :  { %v332_v57 = vld [vmem:[#allocation8 + $0x70] sm:$0xff] }
 0x14c   :  { %v456_v58 = vld [vmem:[#allocation8 + $0x450] sm:$0xff] }
 0x14d   :  { %1997 = vmatpush2.bf16.msra.mxu0 %v4014_v13  ;;  %2038 = vmatpush2.bf16.msra.mxu1 %v4142_v14  ;;  %v500_v13 = vld [vmem:[#allocation8 + $0x5b0] sm:$0xff]  ;;  %v3960_v14 = vcombine.low %v376_v2, %v380_v3 }
 0x14e   :  { %1998 = vmatprep.subr.bf16.mxu0 %v4007_v15  ;;  %2039 = vmatprep.subr.bf16.mxu1 %v4135_v16  ;;  %v4088_v15 = vcombine.low %v504_v4, %v508_v5  ;;  %v3953_v16 = vcombine.high %v368_v10, %v372_v11  ;;  %v4081_v17 = vcombine.high %v496_v12, %v500_v13  ;;  %v320_v3 = vld [vmem:[#allocation8 + $0x10] sm:$0xff] }
 0x14f   :  { %v324_v4 = vld [vmem:[#allocation8 + $0x30] sm:$0xff] }
 0x150   :  { %v448_v5 = vld [vmem:[#allocation8 + $0x410] sm:$0xff] }
 0x151   :  { %1999 = vmatpush2.bf16.msra.mxu0 %v4006_v21  ;;  %2040 = vmatpush2.bf16.msra.mxu1 %v4134_v22  ;;  %v492_v21 = vld [vmem:[#allocation8 + $0x570] sm:$0xff]  ;;  %v3952_v22 = vcombine.low %v368_v10, %v372_v11 }
 0x152   :  { %2000 = vmatprep.subr.bf16.mxu0 %v3999_v23  ;;  %2041 = vmatprep.subr.bf16.mxu1 %v4127_v24  ;;  %v4080_v23 = vcombine.low %v496_v12, %v500_v13  ;;  %v3945_v24 = vcombine.high %v360_v18, %v364_v19  ;;  %v4073_v25 = vcombine.high %v488_v20, %v492_v21  ;;  %v440_v11 = vld [vmem:[#allocation8 + $0x3d0] sm:$0xff] }
 0x153   :  { %v444_v12 = vld [vmem:[#allocation8 + $0x3f0] sm:$0xff] }
 0x154   :  { %v568_v13 = vld [vmem:[#allocation8 + $0x7d0] sm:$0xff] }
 0x155   :  { %2001 = vmatpush2.bf16.msra.mxu0 %v3998_v34  ;;  %2042 = vmatpush2.bf16.msra.mxu1 %v4126_v35  ;;  %v484_v34 = vld [vmem:[#allocation8 + $0x530] sm:$0xff]  ;;  %v3944_v35 = vcombine.low %v360_v18, %v364_v19 }
 0x156   :  { %2002 = vmatprep.subr.bf16.mxu0 %v3991_v36  ;;  %2043 = vmatprep.subr.bf16.mxu1 %v4119_v37  ;;  %v4072_v36 = vcombine.low %v488_v20, %v492_v21  ;;  %v3937_v37 = vcombine.high %v352_v26, %v356_v27  ;;  %v4065_v38 = vcombine.high %v480_v31, %v484_v34  ;;  %v432_v19 = vld [vmem:[#allocation8 + $0x390] sm:$0xff] }
 0x157   :  { %v436_v20 = vld [vmem:[#allocation8 + $0x3b0] sm:$0xff] }
 0x158   :  { %v560_v21 = vld [vmem:[#allocation8 + $0x790] sm:$0xff] }
 0x159   :  { %2003 = vmatpush2.bf16.msra.mxu0 %v3990_v42  ;;  %2044 = vmatpush2.bf16.msra.mxu1 %v4118_v43  ;;  %v476_v42 = vld [vmem:[#allocation8 + $0x4f0] sm:$0xff]  ;;  %v3936_v43 = vcombine.low %v352_v26, %v356_v27 }
 0x15a   :  { %2004 = vmatprep.subr.bf16.mxu0 %v3983_v44  ;;  %2045 = vmatprep.subr.bf16.mxu1 %v4111_v45  ;;  %v4064_v44 = vcombine.low %v480_v31, %v484_v34  ;;  %v3929_v45 = vcombine.high %v344_v39, %v348_v40  ;;  %v4057_v46 = vcombine.high %v472_v41, %v476_v42  ;;  %v424_v27 = vld [vmem:[#allocation8 + $0x350] sm:$0xff] }
 0x15b   :  { %v428_v31 = vld [vmem:[#allocation8 + $0x370] sm:$0xff] }
 0x15c   :  { %v552_v34 = vld [vmem:[#allocation8 + $0x750] sm:$0xff] }
 0x15d   :  { %2005 = vmatpush2.bf16.msra.mxu0 %v3982_v50  ;;  %2046 = vmatpush2.bf16.msra.mxu1 %v4110_v51  ;;  %v468_v50 = vld [vmem:[#allocation8 + $0x4b0] sm:$0xff]  ;;  %v3928_v51 = vcombine.low %v344_v39, %v348_v40 }
 0x15e   :  { %2006 = vmatprep.subr.bf16.mxu0 %v3975_v52  ;;  %2047 = vmatprep.subr.bf16.mxu1 %v4103_v54  ;;  %v4056_v52 = vcombine.low %v472_v41, %v476_v42  ;;  %v3921_v54 = vcombine.high %v336_v47, %v340_v48  ;;  %v4049_v55 = vcombine.high %v464_v49, %v468_v50  ;;  %v416_v40 = vld [vmem:[#allocation8 + $0x310] sm:$0xff] }
 0x15f   :  { %v420_v41 = vld [vmem:[#allocation8 + $0x330] sm:$0xff] }
 0x160   :  { %v544_v42 = vld [vmem:[#allocation8 + $0x710] sm:$0xff] }
 0x161   :  { %2007 = vmatpush2.bf16.msra.mxu0 %v3974_v62  ;;  %2048 = vmatpush2.bf16.msra.mxu1 %v4102_v63  ;;  %v460_v62 = vld [vmem:[#allocation8 + $0x470] sm:$0xff]  ;;  %v3920_v63 = vcombine.low %v336_v47, %v340_v48 }
 0x162   :  { %2008 = vmatprep.subr.bf16.mxu0 %v3967_v0  ;;  %2049 = vmatprep.subr.bf16.mxu1 %v4095_v1  ;;  %v4048_v0 = vcombine.low %v464_v49, %v468_v50  ;;  %v3913_v1 = vcombine.high %v328_v56, %v332_v57  ;;  %v4041_v2 = vcombine.high %v456_v58, %v460_v62  ;;  %v408_v48 = vld [vmem:[#allocation8 + $0x2d0] sm:$0xff] }
 0x163   :  { %v412_v49 = vld [vmem:[#allocation8 + $0x2f0] sm:$0xff] }
 0x164   :  { %v536_v50 = vld [vmem:[#allocation8 + $0x6d0] sm:$0xff] }
 0x165   :  { %2009 = vmatpush2.bf16.msra.mxu0 %v3966_v6  ;;  %2050 = vmatpush2.bf16.msra.mxu1 %v4094_v7  ;;  %v452_v6 = vld [vmem:[#allocation8 + $0x430] sm:$0xff]  ;;  %v3912_v7 = vcombine.low %v328_v56, %v332_v57 }
 0x166   :  { %2060 = vmatprep.subr.bf16.mxu0 %v3961_v8  ;;  %2101 = vmatprep.subr.bf16.mxu1 %v4089_v9  ;;  %v4040_v8 = vcombine.low %v456_v58, %v460_v62  ;;  %v3905_v9 = vcombine.high %v320_v3, %v324_v4  ;;  %v4033_v10 = vcombine.high %v448_v5, %v452_v6  ;;  %v400_v57 = vld [vmem:[#allocation8 + $0x290] sm:$0xff] }
 0x167   :  { %v404_v58 = vld [vmem:[#allocation8 + $0x2b0] sm:$0xff] }
 0x168   :  { %2011 = vmatmul.mubr.bf16.vlgmr.msra.gmra.mxu0 %v4975_v61  ;;  %2052 = vmatmul.mubr.bf16.vlgmr.msra.gmra.mxu1 %v4969_v53  ;;  %v528_v62 = vld [vmem:[#allocation8 + $0x690] sm:$0xff] }
 0x169   :  { %2061 = vmatpush1.bf16.msra.mxu0 %v3960_v14  ;;  %2092 = vmatprep.mubr.bf16.mxu0 %v4971_v59  ;;  %v572_v14 = vld [vmem:[#allocation8 + $0x7f0] sm:$0xff] }
 0x16a   :  { %2102 = vmatpush1.bf16.msra.mxu1 %v4088_v15  ;;  %2133 = vmatprep.mubr.bf16.mxu1 %v4973_v60  ;;  %v3904_v15 = vcombine.low %v320_v3, %v324_v4  ;;  %v4153_v18 = vcombine.high %v568_v13, %v572_v14  ;;  %v392_v4 = vld [vmem:[#allocation8 + $0x250] sm:$0xff] }
 0x16b   :  { %2062 = vmatprep.subr.bf16.mxu0 %v3953_v16  ;;  %2103 = vmatprep.subr.bf16.mxu1 %v4081_v17  ;;  %v4032_v16 = vcombine.low %v448_v5, %v452_v6  ;;  %v4025_v17 = vcombine.high %v440_v11, %v444_v12  ;;  %v396_v5 = vld [vmem:[#allocation8 + $0x270] sm:$0xff] }
 0x16c   :  { %v520_v6 = vld [vmem:[#allocation8 + $0x650] sm:$0xff] }
 0x16d   :  { %2063 = vmatpush1.bf16.msra.mxu0 %v3952_v22  ;;  %v564_v22 = vld [vmem:[#allocation8 + $0x7b0] sm:$0xff] }
 0x16e   :  { %2104 = vmatpush1.bf16.msra.mxu1 %v4080_v23  ;;  %2064 = vmatprep.subr.bf16.mxu0 %v3945_v24  ;;  %v4024_v23 = vcombine.low %v440_v11, %v444_v12  ;;  %v4152_v24 = vcombine.low %v568_v13, %v572_v14  ;;  %v4145_v26 = vcombine.high %v560_v21, %v564_v22  ;;  %v384_v12 = vld [vmem:[#allocation8 + $0x210] sm:$0xff] }
 0x16f   :  { %2105 = vmatprep.subr.bf16.mxu1 %v4073_v25  ;;  %v4017_v25 = vcombine.high %v432_v19, %v436_v20  ;;  %v388_v13 = vld [vmem:[#allocation8 + $0x230] sm:$0xff] }
 0x170   :  { %v512_v14 = vld [vmem:[#allocation8 + $0x610] sm:$0xff] }
 0x171   :  { %2065 = vmatpush1.bf16.msra.mxu0 %v3944_v35  ;;  %v556_v35 = vld [vmem:[#allocation8 + $0x770] sm:$0xff] }
 0x172   :  { %2106 = vmatpush1.bf16.msra.mxu1 %v4072_v36  ;;  %2066 = vmatprep.subr.bf16.mxu0 %v3937_v37  ;;  %v4016_v36 = vcombine.low %v432_v19, %v436_v20  ;;  %v4144_v37 = vcombine.low %v560_v21, %v564_v22  ;;  %v4137_v39 = vcombine.high %v552_v34, %v556_v35  ;;  %v377_v20 = vld [vmem:[#allocation8 + $0x1d8] sm:$0xff] }
 0x173   :  { %2107 = vmatprep.subr.bf16.mxu1 %v4065_v38  ;;  %v4009_v38 = vcombine.high %v424_v27, %v428_v31  ;;  %v381_v21 = vld [vmem:[#allocation8 + $0x1f8] sm:$0xff] }
 0x174   :  { %v505_v22 = vld [vmem:[#allocation8 + $0x5d8] sm:$0xff] }
 0x175   :  { %2067 = vmatpush1.bf16.msra.mxu0 %v3936_v43  ;;  %v548_v43 = vld [vmem:[#allocation8 + $0x730] sm:$0xff] }
 0x176   :  { %2108 = vmatpush1.bf16.msra.mxu1 %v4064_v44  ;;  %2068 = vmatprep.subr.bf16.mxu0 %v3929_v45  ;;  %v4008_v44 = vcombine.low %v424_v27, %v428_v31  ;;  %v4136_v45 = vcombine.low %v552_v34, %v556_v35  ;;  %v4129_v47 = vcombine.high %v544_v42, %v548_v43  ;;  %v369_v31 = vld [vmem:[#allocation8 + $0x198] sm:$0xff] }
 0x177   :  { %2109 = vmatprep.subr.bf16.mxu1 %v4057_v46  ;;  %v4001_v46 = vcombine.high %v416_v40, %v420_v41  ;;  %v373_v34 = vld [vmem:[#allocation8 + $0x1b8] sm:$0xff]  ;;  %v3962_v35 = vcombine.low %v377_v20, %v381_v21 }
 0x179   :  { %2069 = vmatpush1.bf16.msra.mxu0 %v3928_v51  ;;  %v540_v51 = vld [vmem:[#allocation8 + $0x6f0] sm:$0xff] }
 0x17a   :  { %2110 = vmatpush1.bf16.msra.mxu1 %v4056_v52  ;;  %2070 = vmatprep.subr.bf16.mxu0 %v3921_v54  ;;  %v4000_v52 = vcombine.low %v416_v40, %v420_v41  ;;  %v4128_v54 = vcombine.low %v544_v42, %v548_v43  ;;  %v4121_v56 = vcombine.high %v536_v50, %v540_v51  ;;  %v361_v40 = vld [vmem:[#allocation8 + $0x158] sm:$0xff] }
 0x17b   :  { %2111 = vmatprep.subr.bf16.mxu1 %v4049_v55  ;;  %v3993_v55 = vcombine.high %v408_v48, %v412_v49  ;;  %v365_v41 = vld [vmem:[#allocation8 + $0x178] sm:$0xff] }
 0x17c   :  { %v489_v43 = vld [vmem:[#allocation8 + $0x558] sm:$0xff] }
 0x17d   :  { %2071 = vmatpush1.bf16.msra.mxu0 %v3920_v63  ;;  %v532_v63 = vld [vmem:[#allocation8 + $0x6b0] sm:$0xff] }
 0x17e   :  { %2112 = vmatpush1.bf16.msra.mxu1 %v4048_v0  ;;  %2072 = vmatprep.subr.bf16.mxu0 %v3913_v1  ;;  %v3992_v0 = vcombine.low %v408_v48, %v412_v49  ;;  %v4120_v1 = vcombine.low %v536_v50, %v540_v51  ;;  %v4113_v3 = vcombine.high %v528_v62, %v532_v63  ;;  %v353_v49 = vld [vmem:[#allocation8 + $0x118] sm:$0xff] }
 0x17f   :  { %2113 = vmatprep.subr.bf16.mxu1 %v4041_v2  ;;  %v3985_v2 = vcombine.high %v400_v57, %v404_v58  ;;  %v357_v50 = vld [vmem:[#allocation8 + $0x138] sm:$0xff] }
 0x180   :  { %v481_v51 = vld [vmem:[#allocation8 + $0x518] sm:$0xff] }
 0x181   :  { %2073 = vmatpush1.bf16.msra.mxu0 %v3912_v7  ;;  %v524_v7 = vld [vmem:[#allocation8 + $0x670] sm:$0xff] }
 0x182   :  { %2114 = vmatpush1.bf16.msra.mxu1 %v4040_v8  ;;  %2074 = vmatprep.subr.bf16.mxu0 %v3905_v9  ;;  %v3984_v8 = vcombine.low %v400_v57, %v404_v58  ;;  %v4112_v9 = vcombine.low %v528_v62, %v532_v63  ;;  %v4105_v11 = vcombine.high %v520_v6, %v524_v7  ;;  %v345_v57 = vld [vmem:[#allocation8 + $0xd8] sm:$0xff] }
 0x183   :  { %2115 = vmatprep.subr.bf16.mxu1 %v4033_v10  ;;  %v3977_v10 = vcombine.high %v392_v4, %v396_v5  ;;  %v349_v58 = vld [vmem:[#allocation8 + $0xf8] sm:$0xff] }
 0x184   :  { %v473_v62 = vld [vmem:[#allocation8 + $0x4d8] sm:$0xff] }
 0x185   :  { %2075 = vmatpush1.bf16.msra.mxu0 %v3904_v15  ;;  %v516_v15 = vld [vmem:[#allocation8 + $0x630] sm:$0xff]  ;;  %v477_v63 = vld [vmem:[#allocation8 + $0x4f8] sm:$0xff] }
 0x186   :  { %2116 = vmatpush1.bf16.msra.mxu1 %v4032_v16  ;;  %2076 = vmatprep.subr.bf16.mxu0 %v4025_v17  ;;  %v3976_v16 = vcombine.low %v392_v4, %v396_v5  ;;  %v4104_v17 = vcombine.low %v520_v6, %v524_v7  ;;  %v4097_v19 = vcombine.high %v512_v14, %v516_v15  ;;  %v341_v4 = vld [vmem:[#allocation8 + $0xb8] sm:$0xff] }
 0x187   :  { %2117 = vmatprep.subr.bf16.mxu1 %v4153_v18  ;;  %v3969_v18 = vcombine.high %v384_v12, %v388_v13  ;;  %v465_v5 = vld [vmem:[#allocation8 + $0x498] sm:$0xff]  ;;  %v3930_v7 = vcombine.low %v345_v57, %v349_v58 }
 0x188   :  { %v469_v6 = vld [vmem:[#allocation8 + $0x4b8] sm:$0xff] }
 0x189   :  { %2077 = vmatpush2.bf16.msra.mxu0 %v4024_v23  ;;  %v509_v23 = vld [vmem:[#allocation8 + $0x5f8] sm:$0xff] }
 0x18a   :  { %2118 = vmatpush2.bf16.msra.mxu1 %v4152_v24  ;;  %2078 = vmatprep.subr.bf16.mxu0 %v4017_v25  ;;  %v3968_v24 = vcombine.low %v384_v12, %v388_v13  ;;  %v4096_v25 = vcombine.low %v512_v14, %v516_v15  ;;  %v4091_v27 = vcombine.high %v505_v22, %v509_v23  ;;  %v333_v12 = vld [vmem:[#allocation8 + $0x78] sm:$0xff] }
 0x18b   :  { %2119 = vmatprep.subr.bf16.mxu1 %v4145_v26  ;;  %v3963_v26 = vcombine.high %v377_v20, %v381_v21  ;;  %v457_v13 = vld [vmem:[#allocation8 + $0x458] sm:$0xff] }
 0x18c   :  { %v461_v14 = vld [vmem:[#allocation8 + $0x478] sm:$0xff] }
 0x18d   :  { %2079 = vmatpush2.bf16.msra.mxu0 %v4016_v36  ;;  %v497_v36 = vld [vmem:[#allocation8 + $0x598] sm:$0xff] }
 0x18e   :  { %2120 = vmatpush2.bf16.msra.mxu1 %v4144_v37  ;;  %2080 = vmatprep.subr.bf16.mxu0 %v4009_v38  ;;  %v501_v37 = vld [vmem:[#allocation8 + $0x5b8] sm:$0xff]  ;;  %v4090_v38 = vcombine.low %v505_v22, %v509_v23 }
 0x18f   :  { %2121 = vmatprep.subr.bf16.mxu1 %v4137_v39  ;;  %v3955_v39 = vcombine.high %v369_v31, %v373_v34  ;;  %v4083_v42 = vcombine.high %v497_v36, %v501_v37  ;;  %v325_v20 = vld [vmem:[#allocation8 + $0x38] sm:$0xff] }
 0x190   :  { %v449_v21 = vld [vmem:[#allocation8 + $0x418] sm:$0xff] }
 0x191   :  { %2081 = vmatpush2.bf16.msra.mxu0 %v4008_v44  ;;  %v493_v44 = vld [vmem:[#allocation8 + $0x578] sm:$0xff] }
 0x192   :  { %2122 = vmatpush2.bf16.msra.mxu1 %v4136_v45  ;;  %2082 = vmatprep.subr.bf16.mxu0 %v4001_v46  ;;  %v3954_v45 = vcombine.low %v369_v31, %v373_v34  ;;  %v4082_v46 = vcombine.low %v497_v36, %v501_v37  ;;  %v4075_v48 = vcombine.high %v489_v43, %v493_v44  ;;  %v453_v22 = vld [vmem:[#allocation8 + $0x438] sm:$0xff] }
 0x193   :  { %2123 = vmatprep.subr.bf16.mxu1 %v4129_v47  ;;  %v3947_v47 = vcombine.high %v361_v40, %v365_v41  ;;  %v445_v31 = vld [vmem:[#allocation8 + $0x3f8] sm:$0xff]  ;;  %v4034_v37 = vcombine.low %v449_v21, %v453_v22 }
 0x194   :  { %v569_v34 = vld [vmem:[#allocation8 + $0x7d8] sm:$0xff] }
 0x195   :  { %2083 = vmatpush2.bf16.msra.mxu0 %v4000_v52  ;;  %v485_v52 = vld [vmem:[#allocation8 + $0x538] sm:$0xff] }
 0x196   :  { %2124 = vmatpush2.bf16.msra.mxu1 %v4128_v54  ;;  %2084 = vmatprep.subr.bf16.mxu0 %v3993_v55  ;;  %v3946_v54 = vcombine.low %v361_v40, %v365_v41  ;;  %v4074_v55 = vcombine.low %v489_v43, %v493_v44  ;;  %v433_v40 = vld [vmem:[#allocation8 + $0x398] sm:$0xff] }
 0x197   :  { %2125 = vmatprep.subr.bf16.mxu1 %v4121_v56  ;;  %v3939_v56 = vcombine.high %v353_v49, %v357_v50  ;;  %v437_v41 = vld [vmem:[#allocation8 + $0x3b8] sm:$0xff] }
 0x198   :  { %v565_v43 = vld [vmem:[#allocation8 + $0x7b8] sm:$0xff] }
 0x199   :  { %2085 = vmatpush2.bf16.msra.mxu0 %v3992_v0  ;;  %v4066_v0 = vcombine.low %v481_v51, %v485_v52 }
 0x19a   :  { %2126 = vmatpush2.bf16.msra.mxu1 %v4120_v1  ;;  %2086 = vmatprep.subr.bf16.mxu0 %v3985_v2  ;;  %v3931_v1 = vcombine.high %v345_v57, %v349_v58  ;;  %v4059_v2 = vcombine.high %v473_v62, %v477_v63  ;;  %v421_v57 = vld [vmem:[#allocation8 + $0x338] sm:$0xff] }
 0x19b   :  { %2127 = vmatprep.subr.bf16.mxu1 %v4113_v3  ;;  %v337_v3 = vld [vmem:[#allocation8 + $0x98] sm:$0xff] }
 0x19c   :  { %v3922_v15 = vcombine.low %v337_v3, %v341_v4  ;;  %v545_v58 = vld [vmem:[#allocation8 + $0x718] sm:$0xff] }
 0x19d   :  { %2087 = vmatpush2.bf16.msra.mxu0 %v3984_v8  ;;  %v4058_v8 = vcombine.low %v473_v62, %v477_v63  ;;  %v549_v62 = vld [vmem:[#allocation8 + $0x738] sm:$0xff] }
 0x19e   :  { %2128 = vmatpush2.bf16.msra.mxu1 %v4112_v9  ;;  %2088 = vmatprep.subr.bf16.mxu0 %v3977_v10  ;;  %v3923_v9 = vcombine.high %v337_v3, %v341_v4  ;;  %v4051_v10 = vcombine.high %v465_v5, %v469_v6  ;;  %v413_v3 = vld [vmem:[#allocation8 + $0x2f8] sm:$0xff] }
 0x19f   :  { %2129 = vmatprep.subr.bf16.mxu1 %v4105_v11  ;;  %v329_v11 = vld [vmem:[#allocation8 + $0x58] sm:$0xff] }
 0x1a0   :  { %v3914_v23 = vcombine.low %v329_v11, %v333_v12  ;;  %v537_v4 = vld [vmem:[#allocation8 + $0x6d8] sm:$0xff] }
 0x1a1   :  { %2089 = vmatpush2.bf16.msra.mxu0 %v3976_v16  ;;  %v4050_v16 = vcombine.low %v465_v5, %v469_v6  ;;  %v541_v5 = vld [vmem:[#allocation8 + $0x6f8] sm:$0xff] }
 0x1a2   :  { %2130 = vmatpush2.bf16.msra.mxu1 %v4104_v17  ;;  %2090 = vmatprep.subr.bf16.mxu0 %v3969_v18  ;;  %v3915_v17 = vcombine.high %v329_v11, %v333_v12  ;;  %v4043_v18 = vcombine.high %v457_v13, %v461_v14  ;;  %v405_v11 = vld [vmem:[#allocation8 + $0x2b8] sm:$0xff] }
 0x1a3   :  { %2131 = vmatprep.subr.bf16.mxu1 %v4097_v19  ;;  %v321_v19 = vld [vmem:[#allocation8 + $0x18] sm:$0xff] }
 0x1a4   :  { %v3906_v36 = vcombine.low %v321_v19, %v325_v20  ;;  %v529_v12 = vld [vmem:[#allocation8 + $0x698] sm:$0xff] }
 0x1a5   :  { %2091 = vmatpush2.bf16.msra.mxu0 %v3968_v24  ;;  %v4042_v24 = vcombine.low %v457_v13, %v461_v14  ;;  %v533_v13 = vld [vmem:[#allocation8 + $0x6b8] sm:$0xff] }
 0x1a6   :  { %2132 = vmatpush2.bf16.msra.mxu1 %v4096_v25  ;;  %2142 = vmatprep.subr.bf16.mxu0 %v3963_v26  ;;  %v3907_v25 = vcombine.high %v321_v19, %v325_v20  ;;  %v4035_v26 = vcombine.high %v449_v21, %v453_v22  ;;  %v397_v19 = vld [vmem:[#allocation8 + $0x278] sm:$0xff] }
 0x1a7   :  { %2183 = vmatprep.subr.bf16.mxu1 %v4091_v27  ;;  %v441_v27 = vld [vmem:[#allocation8 + $0x3d8] sm:$0xff] }
 0x1a8   :  { %2093 = vmatmul.mubr.bf16.vlgmr.msra.gmra.mxu0 %v4975_v61  ;;  %v4026_v44 = vcombine.low %v441_v27, %v445_v31  ;;  %v521_v20 = vld [vmem:[#allocation8 + $0x658] sm:$0xff] }
 0x1a9   :  { %2134 = vmatmul.mubr.bf16.vlgmr.msra.gmra.mxu1 %v4969_v53  ;;  %2143 = vmatpush1.bf16.msra.mxu0 %v3962_v35  ;;  %v573_v35 = vld [vmem:[#allocation8 + $0x7f8] sm:$0xff] }
 0x1aa   :  { %2174 = vmatprep.mubr.bf16.mxu0 %v4971_v59  ;;  %2184 = vmatpush1.bf16.msra.mxu1 %v4090_v38  ;;  %v4067_v59 = vcombine.high %v481_v51, %v485_v52  ;;  %v4027_v38 = vcombine.high %v441_v27, %v445_v31  ;;  %v557_v51 = vld [vmem:[#allocation8 + $0x778] sm:$0xff]  ;;  %v4018_v52 = vcombine.low %v433_v40, %v437_v41 }
 0x1ab   :  { %2215 = vmatprep.mubr.bf16.mxu1 %v4973_v60  ;;  %2144 = vmatprep.subr.bf16.mxu0 %v3955_v39  ;;  %v3938_v60 = vcombine.low %v353_v49, %v357_v50  ;;  %v4155_v39 = vcombine.high %v569_v34, %v573_v35  ;;  %v429_v49 = vld [vmem:[#allocation8 + $0x378] sm:$0xff] }
 0x1ac   :  { %2185 = vmatprep.subr.bf16.mxu1 %v4083_v42  ;;  %v561_v42 = vld [vmem:[#allocation8 + $0x798] sm:$0xff] }
 0x1ad   :  { %2145 = vmatpush1.bf16.msra.mxu0 %v3954_v45  ;;  %v4154_v45 = vcombine.low %v569_v34, %v573_v35  ;;  %v553_v50 = vld [vmem:[#allocation8 + $0x758] sm:$0xff] }
 0x1ae   :  { %2186 = vmatpush1.bf16.msra.mxu1 %v4082_v46  ;;  %2146 = vmatprep.subr.bf16.mxu0 %v3947_v47  ;;  %v4019_v46 = vcombine.high %v433_v40, %v437_v41  ;;  %v4147_v47 = vcombine.high %v561_v42, %v565_v43  ;;  %v525_v21 = vld [vmem:[#allocation8 + $0x678] sm:$0xff]  ;;  %v4476_v41 = vld [vmem:[#allocation11 + $0xac] ss:$12 sps:$4 sm:$0xff]  }
 0x1af   :  { %2187 = vmatprep.subr.bf16.mxu1 %v4075_v48  ;;  %v425_v48 = vld [vmem:[#allocation8 + $0x358] sm:$0xff] }
 0x1b0   :  { %v4010_v63 = vcombine.low %v425_v48, %v429_v49  ;;  %v389_v27 = vld [vmem:[#allocation8 + $0x238] sm:$0xff] }
 0x1b1   :  { %2147 = vmatpush1.bf16.msra.mxu0 %v3946_v54  ;;  %v4146_v54 = vcombine.low %v561_v42, %v565_v43  ;;  %v513_v31 = vld [vmem:[#allocation8 + $0x618] sm:$0xff]  ;;  %v4488_v42 = vld [vmem:[#allocation11 + $0x22c] ss:$12 sps:$4 sm:$0xff]  }
 0x1b2   :  { %2188 = vmatpush1.bf16.msra.mxu1 %v4074_v55  ;;  %2148 = vmatprep.subr.bf16.mxu0 %v3939_v56  ;;  %v4011_v55 = vcombine.high %v425_v48, %v429_v49  ;;  %v4139_v56 = vcombine.high %v553_v50, %v557_v51  ;;  %v517_v34 = vld [vmem:[#allocation8 + $0x638] sm:$0xff] }
 0x1b3   :  { %2189 = vmatprep.subr.bf16.mxu1 %v4067_v59  ;;  %v417_v59 = vld [vmem:[#allocation8 + $0x318] sm:$0xff]  ;;  %v4098_v40 = vcombine.low %v513_v31, %v517_v34 }
 0x1b4   :  { %v4002_v6 = vcombine.low %v417_v59, %v421_v57  ;;  %v4474_v43 = vld [vmem:[#allocation11 + $0xa8] ss:$12 sps:$4 sm:$0xff]  }
 0x1b5   :  { %2149 = vmatpush1.bf16.msra.mxu0 %v3938_v60  ;;  %v4138_v60 = vcombine.low %v553_v50, %v557_v51  ;;  %v4494_v48 = vld [vmem:[#allocation11 + $0x214] ss:$12 sps:$4 sm:$0xff]   ;;  %v4477_v51 = vld [vmem:[#allocation11 + $0x90] ss:$12 sps:$4 sm:$0xff]  }
 0x1b6   :  { %2190 = vmatpush1.bf16.msra.mxu1 %v4066_v0  ;;  %2150 = vmatprep.subr.bf16.mxu0 %v3931_v1  ;;  %v4003_v0 = vcombine.high %v417_v59, %v421_v57  ;;  %v4131_v1 = vcombine.high %v545_v58, %v549_v62  ;;  %v4500_v57 = vld [vmem:[#allocation11 + $0x1fc] ss:$12 sps:$4 sm:$0xff]  }
 0x1b7   :  { %2191 = vmatprep.subr.bf16.mxu1 %v4059_v2  ;;  %v409_v2 = vld [vmem:[#allocation8 + $0x2d8] sm:$0xff] }
 0x1b8   :  { %v3994_v14 = vcombine.low %v409_v2, %v413_v3 }
 0x1b9   :  { %2151 = vmatpush1.bf16.msra.mxu0 %v3930_v7  ;;  %v4130_v7 = vcombine.low %v545_v58, %v549_v62 }
 0x1ba   :  { %2192 = vmatpush1.bf16.msra.mxu1 %v4058_v8  ;;  %2152 = vmatprep.subr.bf16.mxu0 %v3923_v9  ;;  %v3995_v8 = vcombine.high %v409_v2, %v413_v3  ;;  %v4123_v9 = vcombine.high %v537_v4, %v541_v5  ;;  %v4506_v3 = vld [vmem:[#allocation11 + $0x1e4] ss:$12 sps:$4 sm:$0xff]  }
 0x1bb   :  { %2193 = vmatprep.subr.bf16.mxu1 %v4051_v10  ;;  %v401_v10 = vld [vmem:[#allocation8 + $0x298] sm:$0xff] }
 0x1bc   :  { %v3986_v22 = vcombine.low %v401_v10, %v405_v11 }
 0x1bd   :  { %2153 = vmatpush1.bf16.msra.mxu0 %v3922_v15  ;;  %v4122_v15 = vcombine.low %v537_v4, %v541_v5  ;;  %v4483_v5 = vld [vmem:[#allocation11 + $0x60] ss:$12 sps:$4 sm:$0xff]  }
 0x1be   :  { %2194 = vmatpush1.bf16.msra.mxu1 %v4050_v16  ;;  %2154 = vmatprep.subr.bf16.mxu0 %v3915_v17  ;;  %v3987_v16 = vcombine.high %v401_v10, %v405_v11  ;;  %v4115_v17 = vcombine.high %v529_v12, %v533_v13  ;;  %v4497_v10 = vld [vmem:[#allocation11 + $0x34] ss:$12 sps:$4 sm:$0xff]  }
 0x1bf   :  { %2195 = vmatprep.subr.bf16.mxu1 %v4043_v18  ;;  %v393_v18 = vld [vmem:[#allocation8 + $0x258] sm:$0xff] }
 0x1c0   :  { %v3978_v35 = vcombine.low %v393_v18, %v397_v19  ;;  %v4510_v11 = vld [vmem:[#allocation11 + $0x1c8] ss:$12 sps:$4 sm:$0xff]  }
 0x1c1   :  { %2155 = vmatpush1.bf16.msra.mxu0 %v3914_v23  ;;  %v4114_v23 = vcombine.low %v529_v12, %v533_v13  ;;  %v4518_v12 = vld [vmem:[#allocation11 + $0x1b4] ss:$12 sps:$4 sm:$0xff]   ;;  %v4495_v13 = vld [vmem:[#allocation11 + $0x30] ss:$12 sps:$4 sm:$0xff]  }
 0x1c2   :  { %2196 = vmatpush1.bf16.msra.mxu1 %v4042_v24  ;;  %2156 = vmatprep.subr.bf16.mxu0 %v3907_v25  ;;  %v3979_v24 = vcombine.high %v393_v18, %v397_v19  ;;  %v4107_v25 = vcombine.high %v521_v20, %v525_v21  ;;  %v4509_v18 = vld [vmem:[#allocation11 + $0x4] ss:$12 sps:$4 sm:$0xff]  }
 0x1c3   :  { %2197 = vmatprep.subr.bf16.mxu1 %v4035_v26  ;;  %v385_v26 = vld [vmem:[#allocation8 + $0x218] sm:$0xff]  ;;  %v4522_v19 = vld [vmem:[#allocation11 + $0x198] ss:$12 sps:$4 sm:$0xff]  }
 0x1c5   :  { %2157 = vmatpush1.bf16.msra.mxu0 %v3906_v36  ;;  %v4106_v36 = vcombine.low %v521_v20, %v525_v21  ;;  %v4530_v20 = vld [vmem:[#allocation11 + $0x184] ss:$12 sps:$4 sm:$0xff]   ;;  %v4507_v21 = vld [vmem:[#allocation11] ss:$12 sps:$4 sm:$0xff]  }
 0x1c6   :  { %2198 = vmatpush1.bf16.msra.mxu1 %v4034_v37  ;;  %2158 = vmatprep.subr.bf16.mxu0 %v4027_v38  ;;  %v3971_v37 = vcombine.high %v385_v26, %v389_v27  ;;  %v4099_v38 = vcombine.high %v513_v31, %v517_v34  ;;  %v4542_v31 = vld [vmem:[#allocation11 + $0x2d4] ss:$12 sps:$4 sm:$0xff]   ;;  %v4519_v34 = vld [vmem:[#allocation11 + $0x150] ss:$12 sps:$4 sm:$0xff]  }
 0x1c7   :  { %2199 = vmatprep.subr.bf16.mxu1 %v4155_v39  ;;  %v3970_v39 = vcombine.low %v385_v26, %v389_v27  ;;  %v4521_v26 = vld [vmem:[#allocation11 + $0x154] ss:$12 sps:$4 sm:$0xff]  }
 0x1c8   :  { %v4534_v27 = vld [vmem:[#allocation11 + $0x2e8] ss:$12 sps:$4 sm:$0xff]  }
 0x1c9   :  { %2159 = vmatpush2.bf16.msra.mxu0 %v4026_v44  ;;  %v4991_v44 = vld [vmem:[#allocation10] sm:$0xff] }
 0x1ca   :  { %2200 = vmatpush2.bf16.msra.mxu1 %v4154_v45  ;;  %2160 = vmatprep.subr.bf16.mxu0 %v4019_v46  ;;  %v4479_v45 = vld [vmem:[#allocation11 + $0x94] ss:$12 sps:$4 sm:$0xff]  }
 0x1cb   :  { %2201 = vmatprep.subr.bf16.mxu1 %v4147_v47  ;;  %v4486_v46 = vld [vmem:[#allocation11 + $0x228] ss:$12 sps:$4 sm:$0xff]   ;;  %v583_v47 = vrot.slane %v4991_v44, %v4961_v32 }
 0x1cd   :  { %2161 = vmatpush2.bf16.msra.mxu0 %v4018_v52 }
 0x1ce   :  { %2202 = vmatpush2.bf16.msra.mxu1 %v4146_v54  ;;  %2162 = vmatprep.subr.bf16.mxu0 %v4011_v55  ;;  %v4482_v55 = vld [vmem:[#allocation11 + $0x7c] ss:$12 sps:$4 sm:$0xff]  }
 0x1cf   :  { %2203 = vmatprep.subr.bf16.mxu1 %v4139_v56  ;;  %v4492_v56 = vld [vmem:[#allocation11 + $0x210] ss:$12 sps:$4 sm:$0xff]  }
 0x1d1   :  { %2163 = vmatpush2.bf16.msra.mxu0 %v4010_v63  ;;  %v4480_v63 = vld [vmem:[#allocation11 + $0x78] ss:$12 sps:$4 sm:$0xff]  }
 0x1d2   :  { %2204 = vmatpush2.bf16.msra.mxu1 %v4138_v60  ;;  %2164 = vmatprep.subr.bf16.mxu0 %v4003_v0 }
 0x1d3   :  { %2205 = vmatprep.subr.bf16.mxu1 %v4131_v1  ;;  %v4498_v1 = vld [vmem:[#allocation11 + $0x1f8] ss:$12 sps:$4 sm:$0xff]  }
 0x1d5   :  { %2165 = vmatpush2.bf16.msra.mxu0 %v4002_v6  ;;  %v4491_v6 = vld [vmem:[#allocation11 + $0x4c] ss:$12 sps:$4 sm:$0xff]  }
 0x1d6   :  { %2206 = vmatpush2.bf16.msra.mxu1 %v4130_v7  ;;  %2166 = vmatprep.subr.bf16.mxu0 %v3995_v8  ;;  %v4504_v7 = vld [vmem:[#allocation11 + $0x1e0] ss:$12 sps:$4 sm:$0xff]  }
 0x1d7   :  { %2207 = vmatprep.subr.bf16.mxu1 %v4123_v9  ;;  %v4512_v8 = vld [vmem:[#allocation11 + $0x1cc] ss:$12 sps:$4 sm:$0xff]   ;;  %v4489_v9 = vld [vmem:[#allocation11 + $0x48] ss:$12 sps:$4 sm:$0xff]  }
 0x1d9   :  { %2167 = vmatpush2.bf16.msra.mxu0 %v3994_v14  ;;  %v4503_v14 = vld [vmem:[#allocation11 + $0x1c] ss:$12 sps:$4 sm:$0xff]  }
 0x1da   :  { %2208 = vmatpush2.bf16.msra.mxu1 %v4122_v15  ;;  %2168 = vmatprep.subr.bf16.mxu0 %v3987_v16  ;;  %v4516_v15 = vld [vmem:[#allocation11 + $0x1b0] ss:$12 sps:$4 sm:$0xff]  }
 0x1db   :  { %2209 = vmatprep.subr.bf16.mxu1 %v4115_v17  ;;  %v4524_v16 = vld [vmem:[#allocation11 + $0x19c] ss:$12 sps:$4 sm:$0xff]   ;;  %v4501_v17 = vld [vmem:[#allocation11 + $0x18] ss:$12 sps:$4 sm:$0xff]  }
 0x1dd   :  { %2169 = vmatpush2.bf16.msra.mxu0 %v3986_v22  ;;  %v4515_v22 = vld [vmem:[#allocation11 + $0x16c] ss:$12 sps:$4 sm:$0xff]  }
 0x1de   :  { %2210 = vmatpush2.bf16.msra.mxu1 %v4114_v23  ;;  %2170 = vmatprep.subr.bf16.mxu0 %v3979_v24  ;;  %v4528_v23 = vld [vmem:[#allocation11 + $0x180] ss:$12 sps:$4 sm:$0xff]  }
 0x1df   :  { %2211 = vmatprep.subr.bf16.mxu1 %v4107_v25  ;;  %v4536_v24 = vld [vmem:[#allocation11 + $0x2ec] ss:$12 sps:$4 sm:$0xff]   ;;  %v4513_v25 = vld [vmem:[#allocation11 + $0x168] ss:$12 sps:$4 sm:$0xff]  }
 0x1e1   :  { %2171 = vmatpush2.bf16.msra.mxu0 %v3978_v35  ;;  %v4527_v35 = vld [vmem:[#allocation11 + $0x13c] ss:$12 sps:$4 sm:$0xff]  }
 0x1e2   :  { %2212 = vmatpush2.bf16.msra.mxu1 %v4106_v36  ;;  %2172 = vmatprep.subr.bf16.mxu0 %v3971_v37  ;;  %v4540_v36 = vld [vmem:[#allocation11 + $0x2d0] ss:$12 sps:$4 sm:$0xff]  }
 0x1e3   :  { %2213 = vmatprep.subr.bf16.mxu1 %v4099_v38  ;;  %v4548_v37 = vld [vmem:[#allocation11 + $0x2bc] ss:$12 sps:$4 sm:$0xff]   ;;  %v4525_v38 = vld [vmem:[#allocation11 + $0x138] ss:$12 sps:$4 sm:$0xff]  }
 0x1e5   :  { %2173 = vmatpush2.bf16.msra.mxu0 %v3970_v39  ;;  %v4533_v39 = vld [vmem:[#allocation11 + $0x124] ss:$12 sps:$4 sm:$0xff]  }
 0x1e6   :  { %2214 = vmatpush2.bf16.msra.mxu1 %v4098_v40  ;;  %3537 = vmatprep.subr.bf16.mxu0 %v4476_v41  ;;  %v4546_v40 = vld [vmem:[#allocation11 + $0x2b8] ss:$12 sps:$4 sm:$0xff]  }
 0x1e7   :  { %3578 = vmatprep.subr.bf16.mxu1 %v4488_v42  ;;  %v4554_v41 = vld [vmem:[#allocation11 + $0x2a4] ss:$12 sps:$4 sm:$0xff]   ;;  %v4531_v42 = vld [vmem:[#allocation11 + $0x120] ss:$12 sps:$4 sm:$0xff]  }
 0x1e8   :  { %2175 = vmatmul.mubr.bf16.vlgmr.msra.gmra.mxu0 %v4975_v61  ;;  %v4996_v49 = vpop.f32.mrf.mxu0  ;;  %v4998_v50 = vpop.f32.mrf.mxu1 }
 0x1e9   :  { %2216 = vmatmul.mubr.bf16.vlgmr.msra.gmra.mxu1 %v4969_v53  ;;  %3538 = vmatpush1.bf16.msra.mxu0 %v4474_v43  ;;  %v4485_v53 = vld [vmem:[#allocation11 + $0x64] ss:$12 sps:$4 sm:$0xff]   ;;  %v4539_v43 = vld [vmem:[#allocation11 + $0x10c] ss:$12 sps:$4 sm:$0xff]  }
 0x1ea   :  { %v1932_v52 = vpop.f32.mrf.mxu0  ;;  %v1973_v54 = vpop.f32.mrf.mxu1  ;;  %3539 = vmatprep.subr.bf16.mxu0 %v4479_v45  ;;  %3579 = vmatpush1.bf16.msra.mxu1 %v4486_v46  ;;  %v4552_v45 = vld [vmem:[#allocation11 + $0x2a0] ss:$12 sps:$4 sm:$0xff]  }
 0x1eb   :  { %v1933_v59 = vadd.f32 %v1932_v52, %v583_v47  ;;  %3580 = vmatprep.subr.bf16.mxu1 %v4494_v48  ;;  %v4560_v46 = vld [vmem:[#allocation11 + $0x28c] ss:$12 sps:$4 sm:$0xff]   ;;  %v4537_v47 = vld [vmem:[#allocation11 + $0x108] ss:$12 sps:$4 sm:$0xff]   ;;  %v579_v48 = vrot.slane %v4991_v44, %v4955_v29 }
 0x1ec   :  { %v1934_v58 = vpop.f32.mrf.mxu0  ;;  %v1975_v62 = vpop.f32.mrf.mxu1  ;;  %v4558_v52 = vld [vmem:[#allocation11 + $0x288] ss:$12 sps:$4 sm:$0xff]  }
 0x1ed   :  { %v1974_v61 = vadd.f32 %v1973_v54, %v1933_v59  ;;  %3540 = vmatpush1.bf16.msra.mxu0 %v4477_v51  ;;  %v4545_v51 = vld [vmem:[#allocation11 + $0xf4] ss:$12 sps:$4 sm:$0xff]   ;;  %v4551_v59 = vld [vmem:[#allocation11 + $0xdc] ss:$12 sps:$4 sm:$0xff]   ;;  %v4549_v62 = vld [vmem:[#allocation11 + $0xd8] ss:$12 sps:$4 sm:$0xff]  }
 0x1ee   :  { %v1935_v60 = vpop.f32.mrf.mxu0  ;;  %v1976_v0 = vpop.f32.mrf.mxu1  ;;  %3541 = vmatprep.subr.bf16.mxu0 %v4482_v55  ;;  %3581 = vmatpush1.bf16.msra.mxu1 %v4492_v56  ;;  %v4563_v54 = vld [vmem:[#allocation11 + $0x274] ss:$12 sps:$4 sm:$0xff]   ;;  %v4543_v55 = vld [vmem:[#allocation11 + $0xf0] ss:$12 sps:$4 sm:$0xff]   ;;  %v1931_v56 = vadd.f32 %v4996_v49, %v579_v48 }
 0x1ef   :  { %v2225_v2 = vmax.f32 %v1974_v61, 0.0  ;;  %3582 = vmatprep.subr.bf16.mxu1 %v4500_v57  ;;  %v4561_v57 = vld [vmem:[#allocation11 + $0x270] ss:$12 sps:$4 sm:$0xff]   ;;  %v4564_v60 = vld [vmem:[#allocation11 + $0x258] ss:$12 sps:$4 sm:$0xff]  }
 0x1f0   :  { %v4566_v58 = vld [vmem:[#allocation11 + $0x25c] ss:$12 sps:$4 sm:$0xff]   ;;  %v1972_v61 = vadd.f32 %v4998_v50, %v1931_v56  ;;  %v4569_v0 = vld [vmem:[#allocation11 + $0x244] ss:$12 sps:$4 sm:$0xff]   ;;  %v4567_v49 = vld [vmem:[#allocation11 + $0x240] ss:$12 sps:$4 sm:$0xff]  }
 0x1f1   :  { %v5001_v4 = vpack.c.bf16 %v2225_v2, %v2225_v2  ;;  %3542 = vmatpush1.bf16.msra.mxu0 %v4480_v63  ;;  %v4557_v63 = vld [vmem:[#allocation11 + $0xc4] ss:$12 sps:$4 sm:$0xff]   ;;  %v4572_v2 = vld [vmem:[#allocation11 + $0x3ac] ss:$12 sps:$4 sm:$0xff]   ;;  %v4570_v50 = vld [vmem:[#allocation11 + $0x3a8] ss:$12 sps:$4 sm:$0xff]  }
 0x1f2   :  { %3543 = vmatprep.subr.bf16.mxu0 %v4485_v53  ;;  %3583 = vmatpush1.bf16.msra.mxu1 %v4498_v1  ;;  %v4555_v53 = vld [vmem:[#allocation11 + $0xc0] ss:$12 sps:$4 sm:$0xff]   ;;  %v2224_v1 = vmax.f32 %v1972_v61, 0.0  ;;  %v4593_v48 = vld [vmem:[#allocation11 + $0x304] ss:$12 sps:$4 sm:$0xff]  }
 0x1f3   :  { %3569 = vmatprep.mubr.bf16.mxu0 %v5001_v4  ;;  %3584 = vmatprep.subr.bf16.mxu1 %v4506_v3  ;;  %v4620_v3 = vld [vmem:[#allocation11 + $0x52c] ss:$12 sps:$4 sm:$0xff]   ;;  %v4645_v56 = vld [vmem:[#allocation11 + $0x4b4] ss:$12 sps:$4 sm:$0xff]   ;;  %v4597_v61 = vld [vmem:[#allocation11 + $0x450] ss:$12 sps:$4 sm:$0xff]  }
 0x1f5   :  { %3544 = vmatpush1.bf16.msra.mxu0 %v4483_v5  ;;  %v587_v5 = vrot.slane %v4991_v44, %v4958_v30 }
 0x1f6   :  { %3545 = vmatprep.subr.bf16.mxu0 %v4491_v6  ;;  %3585 = vmatpush1.bf16.msra.mxu1 %v4504_v7  ;;  %v5010_v6 = vpack.c.bf16 %v2224_v1, %v2224_v1  ;;  %v4575_v7 = vld [vmem:[#allocation11 + $0x394] ss:$12 sps:$4 sm:$0xff]  }
 0x1f7   :  { %3586 = vmatprep.subr.bf16.mxu1 %v4512_v8  ;;  %v591_v8 = vrot.slane %v4991_v44, %v138_v33  ;;  %v4653_v1 = vld [vmem:[#allocation11 + $0x480] ss:$12 sps:$4 sm:$0xff]  }
 0x1f9   :  { %3546 = vmatpush1.bf16.msra.mxu0 %v4489_v9 }
 0x1fa   :  { %3547 = vmatprep.subr.bf16.mxu0 %v4497_v10  ;;  %3587 = vmatpush1.bf16.msra.mxu1 %v4510_v11 }
 0x1fb   :  { %3588 = vmatprep.subr.bf16.mxu1 %v4518_v12  ;;  %v4573_v12 = vld [vmem:[#allocation11 + $0x390] ss:$12 sps:$4 sm:$0xff]  }
 0x1fd   :  { %3548 = vmatpush1.bf16.msra.mxu0 %v4495_v13 }
 0x1fe   :  { %3549 = vmatprep.subr.bf16.mxu0 %v4503_v14  ;;  %3589 = vmatpush1.bf16.msra.mxu1 %v4516_v15  ;;  %v4578_v15 = vld [vmem:[#allocation11 + $0x37c] ss:$12 sps:$4 sm:$0xff]  }
 0x1ff   :  { %3590 = vmatprep.subr.bf16.mxu1 %v4524_v16 }
 0x201   :  { %3550 = vmatpush1.bf16.msra.mxu0 %v4501_v17 }
 0x202   :  { %3551 = vmatprep.subr.bf16.mxu0 %v4509_v18  ;;  %3591 = vmatpush1.bf16.msra.mxu1 %v4522_v19 }
 0x203   :  { %3592 = vmatprep.subr.bf16.mxu1 %v4530_v20 }
 0x205   :  { %3552 = vmatpush1.bf16.msra.mxu0 %v4507_v21  ;;  %v4576_v21 = vld [vmem:[#allocation11 + $0x378] ss:$12 sps:$4 sm:$0xff]  }
 0x206   :  { %3553 = vmatprep.subr.bf16.mxu0 %v4515_v22  ;;  %3593 = vmatpush1.bf16.msra.mxu1 %v4528_v23 }
 0x207   :  { %3594 = vmatprep.subr.bf16.mxu1 %v4536_v24  ;;  %v4581_v24 = vld [vmem:[#allocation11 + $0x364] ss:$12 sps:$4 sm:$0xff]  }
 0x209   :  { %3554 = vmatpush2.bf16.msra.mxu0 %v4513_v25 }
 0x20a   :  { %3555 = vmatprep.subr.bf16.mxu0 %v4521_v26  ;;  %3595 = vmatpush2.bf16.msra.mxu1 %v4534_v27  ;;  %v4579_v27 = vld [vmem:[#allocation11 + $0x360] ss:$12 sps:$4 sm:$0xff]  }
 0x20b   :  { %3596 = vmatprep.subr.bf16.mxu1 %v4542_v31  ;;  %v4618_v31 = vld [vmem:[#allocation11 + $0x528] ss:$12 sps:$4 sm:$0xff]  }
 0x20d   :  { %3556 = vmatpush2.bf16.msra.mxu0 %v4519_v34 }
 0x20e   :  { %3557 = vmatprep.subr.bf16.mxu0 %v4527_v35  ;;  %3597 = vmatpush2.bf16.msra.mxu1 %v4540_v36  ;;  %v4584_v35 = vld [vmem:[#allocation11 + $0x34c] ss:$12 sps:$4 sm:$0xff]   ;;  %v4625_v36 = vld [vmem:[#allocation11 + $0x514] ss:$12 sps:$4 sm:$0xff]  }
 0x20f   :  { %3598 = vmatprep.subr.bf16.mxu1 %v4548_v37  ;;  %v4582_v37 = vld [vmem:[#allocation11 + $0x348] ss:$12 sps:$4 sm:$0xff]  }
 0x211   :  { %3558 = vmatpush2.bf16.msra.mxu0 %v4525_v38  ;;  %v4623_v38 = vld [vmem:[#allocation11 + $0x510] ss:$12 sps:$4 sm:$0xff]  }
 0x212   :  { %3559 = vmatprep.subr.bf16.mxu0 %v4533_v39  ;;  %3599 = vmatpush2.bf16.msra.mxu1 %v4546_v40  ;;  %v4587_v39 = vld [vmem:[#allocation11 + $0x334] ss:$12 sps:$4 sm:$0xff]   ;;  %v4630_v40 = vld [vmem:[#allocation11 + $0x4fc] ss:$12 sps:$4 sm:$0xff]  }
 0x213   :  { %3600 = vmatprep.subr.bf16.mxu1 %v4554_v41  ;;  %v4585_v41 = vld [vmem:[#allocation11 + $0x330] ss:$12 sps:$4 sm:$0xff]  }
 0x215   :  { %3560 = vmatpush2.bf16.msra.mxu0 %v4531_v42  ;;  %v4628_v42 = vld [vmem:[#allocation11 + $0x4f8] ss:$12 sps:$4 sm:$0xff]  }
 0x216   :  { %3561 = vmatprep.subr.bf16.mxu0 %v4539_v43  ;;  %3601 = vmatpush2.bf16.msra.mxu1 %v4552_v45  ;;  %v4590_v43 = vld [vmem:[#allocation11 + $0x31c] ss:$12 sps:$4 sm:$0xff]   ;;  %v4635_v45 = vld [vmem:[#allocation11 + $0x4e4] ss:$12 sps:$4 sm:$0xff]  }
 0x217   :  { %3602 = vmatprep.subr.bf16.mxu1 %v4560_v46  ;;  %v4588_v46 = vld [vmem:[#allocation11 + $0x318] ss:$12 sps:$4 sm:$0xff]  }
 0x219   :  { %3562 = vmatpush2.bf16.msra.mxu0 %v4537_v47  ;;  %v4633_v47 = vld [vmem:[#allocation11 + $0x4e0] ss:$12 sps:$4 sm:$0xff]  }
 0x21a   :  { %3563 = vmatprep.subr.bf16.mxu0 %v4545_v51  ;;  %3603 = vmatpush2.bf16.msra.mxu1 %v4558_v52  ;;  %v4640_v51 = vld [vmem:[#allocation11 + $0x4cc] ss:$12 sps:$4 sm:$0xff]  }
 0x21b   :  { %3604 = vmatprep.subr.bf16.mxu1 %v4563_v54  ;;  %v4591_v52 = vld [vmem:[#allocation11 + $0x300] ss:$12 sps:$4 sm:$0xff]   ;;  %v4638_v54 = vld [vmem:[#allocation11 + $0x4c8] ss:$12 sps:$4 sm:$0xff]  }
 0x21d   :  { %3564 = vmatpush2.bf16.msra.mxu0 %v4543_v55  ;;  %v4596_v55 = vld [vmem:[#allocation11 + $0x46c] ss:$12 sps:$4 sm:$0xff]  }
 0x21e   :  { %3565 = vmatprep.subr.bf16.mxu0 %v4551_v59  ;;  %3605 = vmatpush2.bf16.msra.mxu1 %v4561_v57  ;;  %v4594_v59 = vld [vmem:[#allocation11 + $0x468] ss:$12 sps:$4 sm:$0xff]   ;;  %v4643_v57 = vld [vmem:[#allocation11 + $0x4b0] ss:$12 sps:$4 sm:$0xff]  }
 0x21f   :  { %3606 = vmatprep.subr.bf16.mxu1 %v4566_v58  ;;  %v4599_v58 = vld [vmem:[#allocation11 + $0x454] ss:$12 sps:$4 sm:$0xff]  }
 0x221   :  { %3566 = vmatpush2.bf16.msra.mxu0 %v4549_v62  ;;  %v4650_v62 = vld [vmem:[#allocation11 + $0x49c] ss:$12 sps:$4 sm:$0xff]  }
 0x222   :  { %3567 = vmatprep.subr.bf16.mxu0 %v4557_v63  ;;  %3607 = vmatpush2.bf16.msra.mxu1 %v4564_v60  ;;  %v4648_v63 = vld [vmem:[#allocation11 + $0x498] ss:$12 sps:$4 sm:$0xff]   ;;  %v4602_v60 = vld [vmem:[#allocation11 + $0x43c] ss:$12 sps:$4 sm:$0xff]  }
 0x223   :  { %3608 = vmatprep.subr.bf16.mxu1 %v4569_v0  ;;  %v4655_v0 = vld [vmem:[#allocation11 + $0x484] ss:$12 sps:$4 sm:$0xff]  }
 0x225   :  { %3568 = vmatpush2.bf16.msra.mxu0 %v4555_v53  ;;  %v4600_v53 = vld [vmem:[#allocation11 + $0x438] ss:$12 sps:$4 sm:$0xff]  }
 0x226   :  { %3609 = vmatpush2.bf16.msra.mxu1 %v4567_v49  ;;  %3619 = vmatprep.subr.bf16.mxu0 %v4572_v2  ;;  %v4605_v49 = vld [vmem:[#allocation11 + $0x424] ss:$12 sps:$4 sm:$0xff]   ;;  %v4660_v2 = vld [vmem:[#allocation11 + $0x5ec] ss:$12 sps:$4 sm:$0xff]  }
 0x227   :  { %3660 = vmatprep.subr.bf16.mxu1 %v4620_v3  ;;  %v4603_v3 = vld [vmem:[#allocation11 + $0x420] ss:$12 sps:$4 sm:$0xff]  }
 0x228   :  { %v2012_v9 = vpop.f32.mrf.mxu0  ;;  %v2053_v10 = vpop.f32.mrf.mxu1  ;;  %3570 = vmatmul.mubr.bf16.vlgmr.msra.gmra.mxu0 %v5010_v6 }
 0x229   :  { %v2013_v11 = vadd.f32 %v2012_v9, %v587_v5  ;;  %3620 = vmatpush1.bf16.msra.mxu0 %v4570_v50  ;;  %v4658_v5 = vld [vmem:[#allocation11 + $0x5e8] ss:$12 sps:$4 sm:$0xff]   ;;  %v4608_v50 = vld [vmem:[#allocation11 + $0x40c] ss:$12 sps:$4 sm:$0xff]   ;;  %v4663_v9 = vld [vmem:[#allocation11 + $0x5d0] ss:$12 sps:$4 sm:$0xff]  }
 0x22a   :  { %v2014_v13 = vpop.f32.mrf.mxu0  ;;  %v2055_v14 = vpop.f32.mrf.mxu1  ;;  %3621 = vmatprep.subr.bf16.mxu0 %v4575_v7  ;;  %v4665_v7 = vld [vmem:[#allocation11 + $0x5d4] ss:$12 sps:$4 sm:$0xff]  }
 0x22b   :  { %v2054_v16 = vadd.f32 %v2053_v10, %v2013_v11  ;;  %v2015_v17 = vadd.f32 %v2014_v13, %v591_v8  ;;  %v4606_v8 = vld [vmem:[#allocation11 + $0x408] ss:$12 sps:$4 sm:$0xff]   ;;  %v4668_v13 = vld [vmem:[#allocation11 + $0x5b8] ss:$12 sps:$4 sm:$0xff]  }
 0x22c   :  { %v2016_v18 = vpop.f32.mrf.mxu0  ;;  %v2057_v19 = vpop.f32.mrf.mxu1  ;;  %v4611_v10 = vld [vmem:[#allocation11 + $0x3f4] ss:$12 sps:$4 sm:$0xff]   ;;  %v4670_v11 = vld [vmem:[#allocation11 + $0x5bc] ss:$12 sps:$4 sm:$0xff]  }
 0x22d   :  { %v2056_v20 = vadd.f32 %v2055_v14, %v2015_v17  ;;  %3622 = vmatpush1.bf16.msra.mxu0 %v4573_v12  ;;  %v2226_v33 = vmax.f32 %v2054_v16, 0.0  ;;  %v4609_v12 = vld [vmem:[#allocation11 + $0x3f0] ss:$12 sps:$4 sm:$0xff]   ;;  %v4612_v16 = vld [vmem:[#allocation11 + $0x3d8] ss:$12 sps:$4 sm:$0xff]  }
 0x22e   :  { %v2017_v22 = vpop.f32.mrf.mxu0  ;;  %v2058_v23 = vpop.f32.mrf.mxu1  ;;  %3623 = vmatprep.subr.bf16.mxu0 %v4578_v15  ;;  %v4614_v14 = vld [vmem:[#allocation11 + $0x3dc] ss:$12 sps:$4 sm:$0xff]   ;;  %v4675_v15 = vld [vmem:[#allocation11 + $0x5a4] ss:$12 sps:$4 sm:$0xff]   ;;  %v4673_v17 = vld [vmem:[#allocation11 + $0x5a0] ss:$12 sps:$4 sm:$0xff]  }
 0x22f   :  { %v2227_v25 = vmax.f32 %v2056_v20, 0.0  ;;  %v5018_v34 = vpack.c.bf16 %v2226_v33, %v2226_v33  ;;  %v4617_v18 = vld [vmem:[#allocation11 + $0x3c4] ss:$12 sps:$4 sm:$0xff]   ;;  %v4680_v19 = vld [vmem:[#allocation11 + $0x58c] ss:$12 sps:$4 sm:$0xff]   ;;  %v594_v20 = vsub.s32 4, %v4952_v28 }
 0x230   :  { %v4678_v33 = vld [vmem:[#allocation11 + $0x588] ss:$12 sps:$4 sm:$0xff]   ;;  %v4621_v22 = vld [vmem:[#allocation11 + $0x170] ss:$12 sps:$4 sm:$0xff]  }
 0x231   :  { %v5016_v26 = vpack.c.bf16 %v2227_v25, %v2227_v25  ;;  %3624 = vmatpush1.bf16.msra.mxu0 %v4576_v21  ;;  %v4615_v21 = vld [vmem:[#allocation11 + $0x3c0] ss:$12 sps:$4 sm:$0xff]   ;;  %v595_v25 = vrot.slane %v4991_v44, %v594_v20  ;;  %v4686_v20 = vld [vmem:[#allocation11 + $0x3f8] ss:$12 sps:$4 sm:$0xff]  }
 0x232   :  { %3625 = vmatprep.subr.bf16.mxu0 %v4581_v24  ;;  %v4685_v23 = vld [vmem:[#allocation11 + $0x574] ss:$12 sps:$4 sm:$0xff]   ;;  %v598_v24 = vsub.s32 5, %v4952_v28 }
 0x233   :  { %3610 = vmatprep.mubr.bf16.mxu1 %v5016_v26 }
 0x234   :  { %3611 = vmatmul.mubr.bf16.vlgmr.msra.gmra.mxu1 %v5018_v34 }
 0x235   :  { %3626 = vmatpush1.bf16.msra.mxu0 %v4579_v27  ;;  %3661 = vmatpush1.bf16.msra.mxu1 %v4618_v31  ;;  %v4683_v27 = vld [vmem:[#allocation11 + $0x570] ss:$12 sps:$4 sm:$0xff]  }
 0x236   :  { %3627 = vmatprep.subr.bf16.mxu0 %v4584_v35  ;;  %3662 = vmatprep.subr.bf16.mxu1 %v4625_v36  ;;  %v4690_v31 = vld [vmem:[#allocation11 + $0x55c] ss:$12 sps:$4 sm:$0xff]   ;;  %v599_v35 = vrot.slane %v4991_v44, %v598_v24 }
 0x239   :  { %3628 = vmatpush1.bf16.msra.mxu0 %v4582_v37  ;;  %3663 = vmatpush1.bf16.msra.mxu1 %v4623_v38 }
 0x23a   :  { %3629 = vmatprep.subr.bf16.mxu0 %v4587_v39  ;;  %3664 = vmatprep.subr.bf16.mxu1 %v4630_v40  ;;  %v4688_v39 = vld [vmem:[#allocation11 + $0x558] ss:$12 sps:$4 sm:$0xff]  }
 0x23d   :  { %3630 = vmatpush1.bf16.msra.mxu0 %v4585_v41  ;;  %3665 = vmatpush1.bf16.msra.mxu1 %v4628_v42  ;;  %v4695_v41 = vld [vmem:[#allocation11 + $0x544] ss:$12 sps:$4 sm:$0xff]  }
 0x23e   :  { %3631 = vmatprep.subr.bf16.mxu0 %v4590_v43  ;;  %3666 = vmatprep.subr.bf16.mxu1 %v4635_v45 }
 0x241   :  { %3632 = vmatpush1.bf16.msra.mxu0 %v4588_v46  ;;  %3667 = vmatpush1.bf16.msra.mxu1 %v4633_v47 }
 0x242   :  { %3633 = vmatprep.subr.bf16.mxu0 %v4593_v48  ;;  %3668 = vmatprep.subr.bf16.mxu1 %v4640_v51  ;;  %v4693_v51 = vld [vmem:[#allocation11 + $0x540] ss:$12 sps:$4 sm:$0xff]  }
 0x245   :  { %3634 = vmatpush1.bf16.msra.mxu0 %v4591_v52  ;;  %3669 = vmatpush1.bf16.msra.mxu1 %v4638_v54 }
 0x246   :  { %3635 = vmatprep.subr.bf16.mxu0 %v4596_v55  ;;  %3670 = vmatprep.subr.bf16.mxu1 %v4645_v56  ;;  %v4698_v55 = vld [vmem:[#allocation11 + $0x2f0] ss:$12 sps:$4 sm:$0xff]  }
 0x249   :  { %3636 = vmatpush2.bf16.msra.mxu0 %v4594_v59  ;;  %3671 = vmatpush1.bf16.msra.mxu1 %v4643_v57 }
 0x24a   :  { %3637 = vmatprep.subr.bf16.mxu0 %v4599_v58  ;;  %3672 = vmatprep.subr.bf16.mxu1 %v4650_v62  ;;  %v4622_v58 = vld [vmem:[#allocation11 + $0xb0] ss:$12 sps:$4 sm:$0xff]  }
 0x24d   :  { %3638 = vmatpush2.bf16.msra.mxu0 %v4597_v61  ;;  %3673 = vmatpush1.bf16.msra.mxu1 %v4648_v63  ;;  %v4626_v61 = vld [vmem:[#allocation11 + $0x158] ss:$12 sps:$4 sm:$0xff]  }
 0x24e   :  { %3639 = vmatprep.subr.bf16.mxu0 %v4602_v60  ;;  %3674 = vmatprep.subr.bf16.mxu1 %v4655_v0  ;;  %v4627_v63 = vld [vmem:[#allocation11 + $0x98] ss:$12 sps:$4 sm:$0xff]   ;;  %v4631_v60 = vld [vmem:[#allocation11 + $0x140] ss:$12 sps:$4 sm:$0xff]  }
 0x24f   :  { %v4632_v0 = vld [vmem:[#allocation11 + $0x80] ss:$12 sps:$4 sm:$0xff]  }
 0x251   :  { %3640 = vmatpush2.bf16.msra.mxu0 %v4600_v53  ;;  %3675 = vmatpush1.bf16.msra.mxu1 %v4653_v1  ;;  %v4636_v53 = vld [vmem:[#allocation11 + $0x128] ss:$12 sps:$4 sm:$0xff]  }
 0x252   :  { %3641 = vmatprep.subr.bf16.mxu0 %v4605_v49  ;;  %3676 = vmatprep.subr.bf16.mxu1 %v4660_v2  ;;  %v4637_v1 = vld [vmem:[#allocation11 + $0x68] ss:$12 sps:$4 sm:$0xff]   ;;  %v4641_v49 = vld [vmem:[#allocation11 + $0x110] ss:$12 sps:$4 sm:$0xff]  }
 0x253   :  { %v4642_v2 = vld [vmem:[#allocation11 + $0x50] ss:$12 sps:$4 sm:$0xff]  }
 0x255   :  { %3642 = vmatpush2.bf16.msra.mxu0 %v4603_v3  ;;  %3677 = vmatpush2.bf16.msra.mxu1 %v4658_v5  ;;  %v4646_v3 = vld [vmem:[#allocation11 + $0xf8] ss:$12 sps:$4 sm:$0xff]  }
 0x256   :  { %3643 = vmatprep.subr.bf16.mxu0 %v4608_v50  ;;  %3678 = vmatprep.subr.bf16.mxu1 %v4665_v7  ;;  %v4647_v5 = vld [vmem:[#allocation11 + $0x38] ss:$12 sps:$4 sm:$0xff]   ;;  %v4651_v50 = vld [vmem:[#allocation11 + $0xe0] ss:$12 sps:$4 sm:$0xff]   ;;  %v4656_v7 = vld [vmem:[#allocation11 + $0xc8] ss:$12 sps:$4 sm:$0xff]  }
 0x259   :  { %3644 = vmatpush2.bf16.msra.mxu0 %v4606_v8  ;;  %3679 = vmatpush2.bf16.msra.mxu1 %v4663_v9  ;;  %v4657_v8 = vld [vmem:[#allocation11 + $0x8] ss:$12 sps:$4 sm:$0xff]   ;;  %v4661_v9 = vld [vmem:[#allocation11 + $0x470] ss:$12 sps:$4 sm:$0xff]  }
 0x25a   :  { %3645 = vmatprep.subr.bf16.mxu0 %v4611_v10  ;;  %3680 = vmatprep.subr.bf16.mxu1 %v4670_v11  ;;  %v4662_v10 = vld [vmem:[#allocation11 + $0x3b0] ss:$12 sps:$4 sm:$0xff]   ;;  %v4666_v11 = vld [vmem:[#allocation11 + $0x458] ss:$12 sps:$4 sm:$0xff]  }
 0x25d   :  { %3646 = vmatpush2.bf16.msra.mxu0 %v4609_v12  ;;  %3681 = vmatpush2.bf16.msra.mxu1 %v4668_v13  ;;  %v4667_v12 = vld [vmem:[#allocation11 + $0x398] ss:$12 sps:$4 sm:$0xff]   ;;  %v4671_v13 = vld [vmem:[#allocation11 + $0x440] ss:$12 sps:$4 sm:$0xff]  }
 0x25e   :  { %3647 = vmatprep.subr.bf16.mxu0 %v4614_v14  ;;  %3682 = vmatprep.subr.bf16.mxu1 %v4675_v15  ;;  %v4672_v14 = vld [vmem:[#allocation11 + $0x380] ss:$12 sps:$4 sm:$0xff]   ;;  %v4676_v15 = vld [vmem:[#allocation11 + $0x428] ss:$12 sps:$4 sm:$0xff]  }
 0x261   :  { %3648 = vmatpush2.bf16.msra.mxu0 %v4612_v16  ;;  %3683 = vmatpush2.bf16.msra.mxu1 %v4673_v17  ;;  %v4677_v16 = vld [vmem:[#allocation11 + $0x368] ss:$12 sps:$4 sm:$0xff]   ;;  %v4681_v17 = vld [vmem:[#allocation11 + $0x410] ss:$12 sps:$4 sm:$0xff]  }
 0x262   :  { %3649 = vmatprep.subr.bf16.mxu0 %v4617_v18  ;;  %3684 = vmatprep.subr.bf16.mxu1 %v4680_v19  ;;  %v4682_v18 = vld [vmem:[#allocation11 + $0x350] ss:$12 sps:$4 sm:$0xff]   ;;  %v602_v19 = vsub.s32 6, %v4952_v28 }
 0x265   :  { %3650 = vmatpush2.bf16.msra.mxu0 %v4615_v21  ;;  %3685 = vmatpush2.bf16.msra.mxu1 %v4678_v33  ;;  %v603_v21 = vrot.slane %v4991_v44, %v602_v19  ;;  %v4687_v33 = vld [vmem:[#allocation11 + $0x338] ss:$12 sps:$4 sm:$0xff]  }
 0x266   :  { %4348 = vmatprep.subr.bf16.mxu0 %v4621_v22  ;;  %3686 = vmatprep.subr.bf16.mxu1 %v4685_v23  ;;  %v4691_v22 = vld [vmem:[#allocation11 + $0x3e0] ss:$12 sps:$4 sm:$0xff]  }
 0x268   :  { %v2094_v36 = vpop.f32.mrf.mxu0 }
 0x269   :  { %v2095_v37 = vadd.f32 %v2094_v36, %v595_v25  ;;  %v2135_v38 = vpop.f32.mrf.mxu1  ;;  %3687 = vmatpush2.bf16.msra.mxu1 %v4683_v27  ;;  %v4696_v36 = vld [vmem:[#allocation11 + $0x3c8] ss:$12 sps:$4 sm:$0xff]  }
 0x26a   :  { %v2096_v40 = vpop.f32.mrf.mxu0  ;;  %3688 = vmatprep.subr.bf16.mxu1 %v4690_v31  ;;  %v4692_v31 = vld [vmem:[#allocation11 + $0x320] ss:$12 sps:$4 sm:$0xff]  }
 0x26b   :  { %v2136_v42 = vadd.f32 %v2135_v38, %v2095_v37  ;;  %v2097_v43 = vadd.f32 %v2096_v40, %v599_v35  ;;  %v2137_v45 = vpop.f32.mrf.mxu1 }
 0x26c   :  { %v2098_v46 = vpop.f32.mrf.mxu0 }
 0x26d   :  { %v2138_v47 = vadd.f32 %v2137_v45, %v2097_v43  ;;  %v2139_v48 = vpop.f32.mrf.mxu1  ;;  %3689 = vmatpush2.bf16.msra.mxu1 %v4688_v39  ;;  %v2228_v52 = vmax.f32 %v2136_v42, 0.0  ;;  %v4697_v42 = vld [vmem:[#allocation11 + $0x308] ss:$12 sps:$4 sm:$0xff]  }
 0x26e   :  { %v2099_v54 = vpop.f32.mrf.mxu0  ;;  %3690 = vmatprep.subr.bf16.mxu1 %v4695_v41  ;;  %v4699_v48 = vld [vmem:[#allocation11 + $0x230] ss:$12 sps:$4 sm:$0xff]  }
 0x26f   :  { %v2229_v56 = vmax.f32 %v2138_v47, 0.0  ;;  %v2140_v59 = vpop.f32.mrf.mxu1  ;;  %v5026_v62 = vpack.c.bf16 %v2228_v52, %v2228_v52  ;;  %v4700_v52 = vld [vmem:[#allocation11 + $0x2d8] ss:$12 sps:$4 sm:$0xff]  }
 0x270   :  { %v4701_v54 = vld [vmem:[#allocation11 + $0x218] ss:$12 sps:$4 sm:$0xff]   ;;  %v4704_v59 = vld [vmem:[#allocation11 + $0x2a8] ss:$12 sps:$4 sm:$0xff]  }
 0x271   :  { %v2237_v57 = vpack.c.bf16 %v2229_v56, %v2229_v56  ;;  %3691 = vmatpush2.bf16.msra.mxu1 %v4693_v51  ;;  %v4703_v56 = vld [vmem:[#allocation11 + $0x200] ss:$12 sps:$4 sm:$0xff]  }
 0x272   :  { %4370 = vmatprep.subr.bf16.mxu1 %v4698_v55  ;;  %v4702_v55 = vld [vmem:[#allocation11 + $0x2c0] ss:$12 sps:$4 sm:$0xff]  }
 0x273   :  { %3651 = vmatprep.mubr.bf16.mxu0 %v2237_v57 }
 0x274   :  { %3652 = vmatmul.mubr.bf16.vlgmr.msra.gmra.mxu0 %v5026_v62 }
 0x275   :  { %4349 = vmatpush3.bf16.msra.mxu0 %v4622_v58  ;;  %3733 = vmatprep.mubr.bf16.mxu0 %v5001_v4  ;;  %v4652_v4 = vld [vmem:[#allocation11 + $0x20] ss:$12 sps:$4 sm:$0xff]   ;;  %v4706_v58 = vld [vmem:[#allocation11 + $0x290] ss:$12 sps:$4 sm:$0xff]  }
 0x276   :  { %4350 = vmatprep.subr.bf16.mxu0 %v4626_v61  ;;  %v4707_v61 = vld [vmem:[#allocation11 + $0x1d0] ss:$12 sps:$4 sm:$0xff]  }
 0x279   :  { %4351 = vmatpush3.bf16.msra.mxu0 %v4627_v63  ;;  %v4709_v63 = vld [vmem:[#allocation11 + $0x1b8] ss:$12 sps:$4 sm:$0xff]  }
 0x27a   :  { %4352 = vmatprep.subr.bf16.mxu0 %v4631_v60  ;;  %v4710_v60 = vld [vmem:[#allocation11 + $0x260] ss:$12 sps:$4 sm:$0xff]  }
 0x27d   :  { %4353 = vmatpush3.bf16.msra.mxu0 %v4632_v0  ;;  %v4712_v0 = vld [vmem:[#allocation11 + $0x248] ss:$12 sps:$4 sm:$0xff]  }
 0x27e   :  { %4354 = vmatprep.subr.bf16.mxu0 %v4636_v53  ;;  %v4713_v53 = vld [vmem:[#allocation11 + $0x188] ss:$12 sps:$4 sm:$0xff]  }
 0x281   :  { %4355 = vmatpush3.bf16.msra.mxu0 %v4637_v1  ;;  %v4714_v1 = vld [vmem:[#allocation11 + $0x5f0] ss:$12 sps:$4 sm:$0xff]  }
 0x282   :  { %4356 = vmatprep.subr.bf16.mxu0 %v4641_v49  ;;  %v4715_v49 = vld [vmem:[#allocation11 + $0x530] ss:$12 sps:$4 sm:$0xff]  }
 0x285   :  { %4357 = vmatpush3.bf16.msra.mxu0 %v4642_v2  ;;  %v4716_v2 = vld [vmem:[#allocation11 + $0x5d8] ss:$12 sps:$4 sm:$0xff]  }
 0x286   :  { %4358 = vmatprep.subr.bf16.mxu0 %v4646_v3  ;;  %v4717_v3 = vld [vmem:[#allocation11 + $0x518] ss:$12 sps:$4 sm:$0xff]  }
 0x289   :  { %4359 = vmatpush3.bf16.msra.mxu0 %v4647_v5  ;;  %v4718_v5 = vld [vmem:[#allocation11 + $0x5c0] ss:$12 sps:$4 sm:$0xff]  }
 0x28a   :  { %4360 = vmatprep.subr.bf16.mxu0 %v4651_v50  ;;  %v4719_v50 = vld [vmem:[#allocation11 + $0x500] ss:$12 sps:$4 sm:$0xff]  }
 0x28d   :  { %4361 = vmatpush3.bf16.msra.mxu0 %v4652_v4  ;;  %v4720_v4 = vld [vmem:[#allocation11 + $0x5a8] ss:$12 sps:$4 sm:$0xff]  }
 0x28e   :  { %4362 = vmatprep.subr.bf16.mxu0 %v4656_v7  ;;  %v4721_v7 = vld [vmem:[#allocation11 + $0x4e8] ss:$12 sps:$4 sm:$0xff]  }
 0x291   :  { %4363 = vmatpush3.bf16.msra.mxu0 %v4657_v8  ;;  %v4722_v8 = vld [vmem:[#allocation11 + $0x590] ss:$12 sps:$4 sm:$0xff]  }
 0x292   :  { %4392 = vmatprep.subr.bf16.mxu0 %v4661_v9  ;;  %v4723_v9 = vld [vmem:[#allocation11 + $0x4d0] ss:$12 sps:$4 sm:$0xff]  }
 0x294   :  { %3734 = vmatmul.mubr.bf16.vlgmr.msra.gmra.mxu0 %v5010_v6  ;;  %v606_v6 = vsub.s32 7, %v4952_v28 }
 0x295   :  { %4393 = vmatpush3.bf16.msra.mxu0 %v4662_v10  ;;  %3813 = vmatprep.mubr.bf16.mxu0 %v2237_v57  ;;  %v4705_v57 = vld [vmem:[#allocation11 + $0x1e8] ss:$12 sps:$4 sm:$0xff]   ;;  %v4724_v10 = vld [vmem:[#allocation11 + $0x578] ss:$12 sps:$4 sm:$0xff]  }
 0x296   :  { %4394 = vmatprep.subr.bf16.mxu0 %v4666_v11  ;;  %v607_v23 = vrot.slane %v4991_v44, %v606_v6  ;;  %v4725_v11 = vld [vmem:[#allocation11 + $0x4b8] ss:$12 sps:$4 sm:$0xff]  }
 0x299   :  { %4395 = vmatpush3.bf16.msra.mxu0 %v4667_v12 }
 0x29a   :  { %4396 = vmatprep.subr.bf16.mxu0 %v4671_v13  ;;  %v4727_v13 = vld [vmem:[#allocation11 + $0x4a0] ss:$12 sps:$4 sm:$0xff]  }
 0x29d   :  { %4397 = vmatpush3.bf16.msra.mxu0 %v4672_v14 }
 0x29e   :  { %4398 = vmatprep.subr.bf16.mxu0 %v4676_v15  ;;  %v4728_v15 = vld [vmem:[#allocation11 + $0x548] ss:$12 sps:$4 sm:$0xff]  }
 0x2a1   :  { %4399 = vmatpush3.bf16.msra.mxu0 %v4677_v16  ;;  %v2496_v16 = vld [vmem:[%s5057_s6] sm:$0x7]  ;;  %s4893_s6 = smov [#allocation13]  }
 0x2a2   :  { %4400 = vmatprep.subr.bf16.mxu0 %v4681_v17  ;;  %v2505_v6 = vrot.slane %v2496_v16, %v4961_v32  ;;  %s3870_s10 = sshll.u32 %s4893_s6, 4  ;;  %s3871_s10 = int_to_ptr.vmem [resolvable:$true] %s3870_s10 }
 0x2a3   :  { %s4850_s11 = scalar_lea.vmem %s3871_s10, 384  ;;  %p4855_p3 = scmp.lt.s32.totalorder %s3871_s10, %s3871_s10 }
 0x2a4   :  { %p4851_p2 = scmp.ne.s32.totalorder %s3871_s10, %s4850_s11  ;;  %p4856_p4 = scmp.lt.s32.totalorder %s4850_s11, %s4850_s11 }
 0x2a5   :  { %4401 = vmatpush3.bf16.msra.mxu0 %v4682_v18  ;;  %v4729_v18 = vld [vmem:[#allocation11 + $0x488] ss:$12 sps:$4 sm:$0xff]  }
 0x2a6   :  { %4402 = vmatprep.subr.bf16.mxu0 %v4686_v20  ;;  %v2501_v20 = vrot.slane %v2496_v16, %v4955_v29  ;;  %p4857_p5 = por %p4856_p4, %p4855_p3 }
 0x2a8   :  { %v2176_v24 = vpop.f32.mrf.mxu0  ;;  %p4858_p6 = pnand %p4857_p5, %p4851_p2 }
 0x2a9   :  { %v2177_v25 = vadd.f32 %v2176_v24, %v603_v21  ;;  %v2217_v27 = vpop.f32.mrf.mxu1  ;;  %4403 = vmatpush3.bf16.msra.mxu0 %v4687_v33 }
 0x2aa   :  { %v2178_v35 = vpop.f32.mrf.mxu0  ;;  %4404 = vmatprep.subr.bf16.mxu0 %v4691_v22 }
 0x2ab   :  { %v2218_v37 = vadd.f32 %v2217_v27, %v2177_v25  ;;  %v2179_v38 = vadd.f32 %v2178_v35, %v607_v23  ;;  %v2219_v39 = vpop.f32.mrf.mxu1 }
 0x2ac   :  { %v2180_v28 = vpop.f32.mrf.mxu0 }
 0x2ad   :  { %v2220_v40 = vadd.f32 %v2219_v39, %v2179_v38  ;;  %v2221_v41 = vpop.f32.mrf.mxu1  ;;  %4405 = vmatpush3.bf16.msra.mxu0 %v4692_v31  ;;  %v2230_v43 = vmax.f32 %v2218_v37, 0.0 }
 0x2ae   :  { %v2181_v45 = vpop.f32.mrf.mxu0  ;;  %4406 = vmatprep.subr.bf16.mxu0 %v4696_v36 }
 0x2af   :  { %v2231_v44 = vmax.f32 %v2220_v40, 0.0  ;;  %v2222_v46 = vpop.f32.mrf.mxu1  ;;  %v5035_v51 = vpack.c.bf16 %v2230_v43, %v2230_v43 }
 0x2b1   :  { %v2239_v47 = vpack.c.bf16 %v2231_v44, %v2231_v44  ;;  %4407 = vmatpush3.bf16.msra.mxu0 %v4697_v42 }
 0x2b3   :  { %3692 = vmatprep.mubr.bf16.mxu1 %v2239_v47 }
 0x2b4   :  { %3814 = vmatmul.mubr.bf16.vlgmr.msra.gmra.mxu0 %v5026_v62  ;;  %3693 = vmatmul.mubr.bf16.vlgmr.msra.gmra.mxu1 %v5035_v51  ;;  %v4708_v62 = vld [vmem:[#allocation11 + $0x278] ss:$12 sps:$4 sm:$0xff]  }
 0x2b5   :  { %4371 = vmatpush3.bf16.msra.mxu1 %v4699_v48  ;;  %3773 = vmatprep.mubr.bf16.mxu1 %v5016_v26  ;;  %v4711_v26 = vld [vmem:[#allocation11 + $0x1a0] ss:$12 sps:$4 sm:$0xff]  }
 0x2b6   :  { %4372 = vmatprep.subr.bf16.mxu1 %v4700_v52 }
 0x2b9   :  { %4373 = vmatpush3.bf16.msra.mxu1 %v4701_v54 }
 0x2ba   :  { %4374 = vmatprep.subr.bf16.mxu1 %v4702_v55 }
 0x2bd   :  { %4375 = vmatpush3.bf16.msra.mxu1 %v4703_v56  ;;  %v2509_v56 = vrot.slane %v2496_v16, %v4958_v30 }
 0x2be   :  { %4376 = vmatprep.subr.bf16.mxu1 %v4704_v59 }
 0x2c1   :  { %4377 = vmatpush3.bf16.msra.mxu1 %v4705_v57 }
 0x2c2   :  { %4378 = vmatprep.subr.bf16.mxu1 %v4706_v58 }
 0x2c5   :  { %4379 = vmatpush3.bf16.msra.mxu1 %v4707_v61 }
 0x2c6   :  { %4380 = vmatprep.subr.bf16.mxu1 %v4708_v62 }
 0x2c9   :  { %4381 = vmatpush3.bf16.msra.mxu1 %v4709_v63 }
 0x2ca   :  { %4382 = vmatprep.subr.bf16.mxu1 %v4710_v60 }
 0x2cd   :  { %4383 = vmatpush3.bf16.msra.mxu1 %v4711_v26 }
 0x2ce   :  { %4384 = vmatprep.subr.bf16.mxu1 %v4712_v0 }
 0x2d1   :  { %4385 = vmatpush3.bf16.msra.mxu1 %v4713_v53 }
 0x2d2   :  { %4414 = vmatprep.subr.bf16.mxu1 %v4714_v1 }
 0x2d4   :  { %3774 = vmatmul.mubr.bf16.vlgmr.msra.gmra.mxu1 %v5018_v34  ;;  %v4726_v34 = vld [vmem:[#allocation11 + $0x560] ss:$12 sps:$4 sm:$0xff]  }
 0x2d5   :  { %4415 = vmatpush3.bf16.msra.mxu1 %v4715_v49  ;;  %3853 = vmatprep.mubr.bf16.mxu1 %v2239_v47 }
 0x2d6   :  { %4416 = vmatprep.subr.bf16.mxu1 %v4716_v2 }
 0x2d9   :  { %4417 = vmatpush3.bf16.msra.mxu1 %v4717_v3 }
 0x2da   :  { %4418 = vmatprep.subr.bf16.mxu1 %v4718_v5 }
 0x2dd   :  { %4419 = vmatpush3.bf16.msra.mxu1 %v4719_v50 }
 0x2de   :  { %4420 = vmatprep.subr.bf16.mxu1 %v4720_v4 }
 0x2e1   :  { %4421 = vmatpush3.bf16.msra.mxu1 %v4721_v7 }
 0x2e2   :  { %4422 = vmatprep.subr.bf16.mxu1 %v4722_v8 }
 0x2e5   :  { %4423 = vmatpush3.bf16.msra.mxu1 %v4723_v9 }
 0x2e6   :  { %4424 = vmatprep.subr.bf16.mxu1 %v4724_v10 }
 0x2e8   :  { %v3571_v12 = vpop.f32.mrf.mxu0 }
 0x2e9   :  { %4425 = vmatpush3.bf16.msra.mxu1 %v4725_v11  ;;  %v3572_v21 = vadd.f32 %v3571_v12, %v2501_v20 }
 0x2ea   :  { %v3573_v14 = vpop.f32.mrf.mxu0  ;;  %4426 = vmatprep.subr.bf16.mxu1 %v4726_v34 }
 0x2eb   :  { %v3574_v22 = vadd.f32 %v3573_v14, %v2505_v6 }
 0x2ec   :  { %v3575_v17 = vpop.f32.mrf.mxu0 }
 0x2ed   :  { %4427 = vmatpush3.bf16.msra.mxu1 %v4727_v13 }
 0x2ee   :  { %v3576_v19 = vpop.f32.mrf.mxu0  ;;  %4428 = vmatprep.subr.bf16.mxu1 %v4728_v15 }
 0x2f1   :  { %4429 = vmatpush3.bf16.msra.mxu1 %v4729_v18 }
 0x2f4   :  { %3854 = vmatmul.mubr.bf16.vlgmr.msra.gmra.mxu1 %v5035_v51  ;;  %v3612_v33 = vpop.f32.mrf.mxu1 }
 0x2f5   :  { %v3613_v23 = vadd.f32 %v3612_v33, %v3572_v21 }
 0x2f6   :  { %v3614_v24 = vpop.f32.mrf.mxu1 }
 0x2f7   :  { %v3615_v25 = vadd.f32 %v3614_v24, %v3574_v22 }
 0x2f8   :  { %v3616_v27 = vpop.f32.mrf.mxu1 }
 0x2fa   :  { %v3617_v31 = vpop.f32.mrf.mxu1 }
 0x334   :  { %v3653_v35 = vpop.f32.mrf.mxu0 }
 0x335   :  { %v3654_v41 = vadd.f32 %v3653_v35, %v3613_v23 }
 0x336   :  { %v3655_v36 = vpop.f32.mrf.mxu0 }
 0x337   :  { %v3656_v45 = vadd.f32 %v3655_v36, %v3615_v25 }
 0x338   :  { %v3657_v37 = vpop.f32.mrf.mxu0 }
 0x33a   :  { %v3658_v38 = vpop.f32.mrf.mxu0 }
 0x354   :  { %v4364_v39 = vpop.f32.mrf.mxu0 }
 0x356   :  { %v4365_v28 = vpop.f32.mrf.mxu0 }
 0x357   :  { %v4366_v29 = vadd.f32 %v4365_v28, %v4364_v39 }
 0x358   :  { %v4367_v40 = vpop.f32.mrf.mxu0 }
 0x359   :  { %v3736_v58 = vadd.f32 %v4366_v29, %v2509_v56 }
 0x35a   :  { %v4368_v32 = vpop.f32.mrf.mxu0 }
 0x374   :  { %v4408_v42 = vpop.f32.mrf.mxu0  ;;  %v3694_v43 = vpop.f32.mrf.mxu1 }
 0x375   :  { %v3695_v44 = vadd.f32 %v3694_v43, %v3654_v41 }
 0x376   :  { %v4409_v46 = vpop.f32.mrf.mxu0  ;;  %v3696_v47 = vpop.f32.mrf.mxu1 }
 0x377   :  { %3861 = vst [vmem:[#allocation13] sm:$0xff] %v3695_v44  ;;  %v3697_v48 = vadd.f32 %v3696_v47, %v3656_v45  ;;  %v4410_v63 = vadd.f32 %v4409_v46, %v4408_v42 }
 0x378   :  { %v4411_v51 = vpop.f32.mrf.mxu0  ;;  %v3698_v52 = vpop.f32.mrf.mxu1 }
 0x379   :  { %3862 = vst [vmem:[#allocation13 + $0x8] sm:$0xff] %v3697_v48 }
 0x37a   :  { %v4412_v54 = vpop.f32.mrf.mxu0  ;;  %v3699_v55 = vpop.f32.mrf.mxu1 }
 0x394   :  { %v4386_v59 = vpop.f32.mrf.mxu1 }
 0x396   :  { %v4387_v57 = vpop.f32.mrf.mxu1 }
 0x397   :  { %v4388_v61 = vadd.f32 %v4387_v57, %v4386_v59 }
 0x398   :  { %v4389_v62 = vpop.f32.mrf.mxu1 }
 0x399   :  { %v3776_v60 = vadd.f32 %v4388_v61, %v3736_v58 }
 0x39a   :  { %v4390_v26 = vpop.f32.mrf.mxu1 }
 0x39b   :  { %v3816_v0 = vadd.f32 %v4410_v63, %v3776_v60 }
 0x3b4   :  { %v4430_v53 = vpop.f32.mrf.mxu1 }
 0x3b6   :  { %v4431_v1 = vpop.f32.mrf.mxu1 }
 0x3b7   :  { %v4432_v49 = vadd.f32 %v4431_v1, %v4430_v53 }
 0x3b8   :  { %v4433_v2 = vpop.f32.mrf.mxu1 }
 0x3b9   :  { %v3856_v3 = vadd.f32 %v4432_v49, %v3816_v0 }
 0x3ba   :  { %v4434_v5 = vpop.f32.mrf.mxu1 }
 0x3bb   :  { %3863 = vst [vmem:[#allocation13 + $0x10] sm:$0xff] %v3856_v3 }
 0x3bc   :  { %4861 = shalt.err (!%p4858_p6)
}
 0x3bd   :  { %3873 = dma.vmem_to_hbm [thread:$0]  %s3871_s10, 384, %s5058_s7, [#allocation4]  }
 0x3be   :  { %4878 = dma.done.wait [#allocation4], 384  }
 0x3bf   :  { %4879 = vsyncadd [#allocation4], 4294966912 }
 0x3c0   :  { %3877 = vsyncpa [#allocation3], 1 }
 0x3c1   :  { %3878 = vsyncpa [#allocation6], 1 }
 0x3c2   :  { %3879 = vsyncpa [#allocation9], 1 }
 0x3c3   :  { %3880 = vsyncpa [#allocation12], 1 }
 0x3c4   :  { %3881 = vsyncpa [#allocation4], 1 }

</bundles_post_ra>
